<compile_context>
chip_gen: v6e
topology: v6e:2x2x1
jax: 0.10.0
libtpu: 0.0.40
codegen_flags: <defaults>
</compile_context>

<pallas_src>
import functools

import numpy as np
import jax
import jax.numpy as jnp
from jax import lax
from jax.experimental import pallas as pl
from jax.experimental.pallas import tpu as pltpu

BN_EPS = 1e-5
_MXU_DTYPE = jnp.bfloat16          # MXU operand dtype; accumulation is always f32.


def _mm(a, b):
    return jnp.dot(a.astype(_MXU_DTYPE), b.astype(_MXU_DTYPE),
                   preferred_element_type=jnp.float32)


# ------------------------------ fused kernel -------------------------------- #

def _decoder_block_kernel(x_ref, skp_ref, upw_ref, t1u_ref, t1s_ref, t2_ref,
                          g_ref, prm_ref, o_ref, up_pad, h1_pad,
                          *, n, h, h2, w2, co):
    lc = w2 * co                          # lane width of every activation slab
    rr = n * h2                           # rows of every conv in/out slab
    inv_cnt = 1.0 / float(n * h2 * w2)    # BatchNorm population size per channel
    prm = prm_ref[...]                    # (7, lc) f32: up_b, b1, g1, bt1, b2, g2, bt2
    g_mat = g_ref[...]                    # (lc, lc) f32 0/1 channel-group matrix

    def conv3x3_rows(xpad_ref, w_ref):
        # y-padded lane-dense input (n, h2+2, lin); Toeplitz banks (3, lin, lc).
        # One MXU matmul per ky on a y-shifted row slab; x padding is implicit in
        # the Toeplitz band (out-of-range taps simply have no entries).
        lin = xpad_ref.shape[-1]
        acc = _mm(xpad_ref[:, 0:h2, :].reshape(rr, lin), w_ref[0])
        for ky in (1, 2):
            acc = acc + _mm(xpad_ref[:, ky:ky + h2, :].reshape(rr, lin), w_ref[ky])
        return acc                                             # (rr, lc) f32

    def bn_relu(acc, gamma_row, beta_row):
        # Two-pass BatchNorm2d (training-mode batch stats, biased variance), f32.
        # Cross-x per-channel sums ride the (idle) MXU via the 0/1 group matrix;
        # the remaining row reduction is a small sublane reduce.
        mean = jnp.sum(jnp.dot(acc, g_mat, preferred_element_type=jnp.float32),
                       axis=0, keepdims=True) * inv_cnt
        cen = acc - mean
        var = jnp.sum(jnp.dot(cen * cen, g_mat, preferred_element_type=jnp.float32),
                      axis=0, keepdims=True) * inv_cnt
        y = cen * lax.rsqrt(var + BN_EPS) * gamma_row + beta_row
        return jnp.maximum(y, 0.0)

    # ---- ConvTranspose2d(k=2,s=2): one matmul per output-row parity (ky); the kx
    # interleave is baked into the dense weight's column order, so the sub-pixel
    # interleave reduces to a row-pair stack + leading-dim reshape (no masks).
    r0 = _mm(x_ref[...], upw_ref[0]) + prm[0:1, :]             # rows y2 = 2i
    r1 = _mm(x_ref[...], upw_ref[1]) + prm[0:1, :]             # rows y2 = 2i + 1
    up = jnp.stack([r0.reshape(n, h, lc), r1.reshape(n, h, lc)],
                   axis=2).reshape(n, h2, lc)

    # zero only the 1-row y halos; interior written once (no full-buffer memset)
    zrow = jnp.zeros((n, 1, lc), _MXU_DTYPE)
    up_pad[:, 0:1, :] = zrow
    up_pad[:, h2 + 1:h2 + 2, :] = zrow
    up_pad[:, 1:h2 + 1, :] = up.astype(_MXU_DTYPE)

    # ---- conv1 + BN + ReLU: up-channel and skip-channel Toeplitz banks are summed
    # directly, so the channel concat never materializes.
    acc1 = (conv3x3_rows(up_pad, t1u_ref) + conv3x3_rows(skp_ref, t1s_ref)
            + prm[1:2, :])
    a1 = bn_relu(acc1, prm[2:3, :], prm[3:4, :])               # (rr, lc) f32

    h1_pad[:, 0:1, :] = zrow
    h1_pad[:, h2 + 1:h2 + 2, :] = zrow
    h1_pad[:, 1:h2 + 1, :] = a1.reshape(n, h2, lc).astype(_MXU_DTYPE)

    # ---- conv2 + BN + ReLU
    acc2 = conv3x3_rows(h1_pad, t2_ref) + prm[4:5, :]
    a2 = bn_relu(acc2, prm[5:6, :], prm[6:7, :])

    # already lane-dense (rows=(n,y), cols=(x,c)) -> single full-lane store
    o_ref[...] = a2.astype(o_ref.dtype)


# ------------------------------- JAX wrapper -------------------------------- #

def decoder_block_forward(x_nchw, skip_nchw, p):
    x = jnp.transpose(x_nchw, (0, 2, 3, 1)).astype(jnp.float32)        # (N, H, W, Ci)
    skip = jnp.transpose(skip_nchw, (0, 2, 3, 1)).astype(jnp.float32)  # (N, 2H, 2W, Cs)
    N, H, W, Ci = x.shape
    _, H2, W2, Cs = skip.shape
    Co = p["up_b"].shape[0]
    assert (H2, W2, Cs) == (2 * H, 2 * W, Co)
    L = W2 * Co                     # lane width of all activation slabs (128 here)
    Ls = W2 * Cs
    Rr = N * H2

    # lane-dense inputs: rows=(n,y), cols=(x,c); skip is y-padded on host so the
    # kernel never zero-fills a full buffer for it.
    x2d = x.reshape(N * H, W * Ci).astype(_MXU_DTYPE)
    skip_pad = jnp.pad(skip.reshape(N, H2, Ls),
                       ((0, 0), (1, 1), (0, 0))).astype(_MXU_DTYPE)

    # ConvTranspose2d weight (Ci, Co, 2, 2) -> two lane-interleaved dense banks,
    # one per output-row parity ky; columns ordered (x2 = 2j + kx, co).
    up_banks = []
    for ky in range(2):
        u = 0.0
        for kx in range(2):
            e = np.zeros((W, W2), np.float32)
            e[np.arange(W), 2 * np.arange(W) + kx] = 1.0
            u = u + jnp.kron(jnp.asarray(e), p["up_w"][:, :, ky, kx])
        up_banks.append(u)
    upw = jnp.stack(up_banks, axis=0).astype(_MXU_DTYPE)        # (2, W*Ci, L)

    # Conv2d weights (Co, Cin, 3, 3) -> banded block-Toeplitz banks (3, W2*Cin, W2*Co):
    # T[ky][xi*Cin+ci, xo*Co+co] = w[co, ci, ky, xi-xo+1]; "SAME" x-padding is
    # implicit because out-of-range taps have no band entries.
    def toeplitz_bank(w_oihw, ci_lo, ci_hi):
        banks = []
        for ky in range(3):
            t = 0.0
            for dx in range(3):
                blk = jnp.transpose(w_oihw[:, ci_lo:ci_hi, ky, dx], (1, 0))   # (Cin, Co)
                t = t + jnp.kron(jnp.eye(W2, k=1 - dx, dtype=jnp.float32), blk)
            banks.append(t)
        return jnp.stack(banks, axis=0).astype(_MXU_DTYPE)

    t1u = toeplitz_bank(p["w1"], 0, Co)            # conv1, up-channel half
    t1s = toeplitz_bank(p["w1"], Co, Co + Cs)      # conv1, skip-channel half
    t2 = toeplitz_bank(p["w2"], 0, Co)             # conv2

    # 0/1 per-channel group matrix for the BatchNorm cross-x reductions (MXU), f32.
    gmat = jnp.kron(jnp.ones((W2, W2), jnp.float32), jnp.eye(Co, dtype=jnp.float32))
    # upsample bias / conv biases / BN affine, each tiled across x -> one operand.
    prm = jnp.stack([jnp.tile(v, W2) for v in
                     (p["up_b"], p["b1"], p["g1"], p["beta1"],
                      p["b2"], p["g2"], p["beta2"])], axis=0)   # (7, L) f32

    flops = (2 * 2 * (N * H) * (W * Ci) * L        # ConvTranspose banks
             + 3 * 2 * Rr * L * L                  # conv1 up Toeplitz banks
             + 3 * 2 * Rr * Ls * L                 # conv1 skip Toeplitz banks
             + 3 * 2 * Rr * L * L                  # conv2 Toeplitz banks
             + 4 * 2 * Rr * L * L)                 # BN group-sum matmuls
    bytes_accessed = (2 * (x2d.size + skip_pad.size + upw.size
                           + t1u.size + t1s.size + t2.size)
                      + 4 * (gmat.size + prm.size) + 4 * Rr * L)

    kernel = functools.partial(_decoder_block_kernel,
                               n=N, h=H, h2=H2, w2=W2, co=Co)

    # TODO(synk): for production shapes add a row-tiled grid (BlockSpec-pipelined
    # DMA/compute overlap) and, on v7x, a leading "parallel" axis over the two
    # TensorCores with a cross-tile two-pass BatchNorm reduction; at these shapes
    # a single fused VMEM-resident step is both correct and fastest.
    out2d = pl.pallas_call(
        kernel,
        out_shape=jax.ShapeDtypeStruct((Rr, L), jnp.float32),
        grid=(1,),
        in_specs=[
            pl.BlockSpec((N * H, W * Ci), lambda i: (0, 0)),
            pl.BlockSpec((N, H2 + 2, Ls), lambda i: (0, 0, 0)),
            pl.BlockSpec((2, W * Ci, L), lambda i: (0, 0, 0)),
            pl.BlockSpec((3, L, L), lambda i: (0, 0, 0)),
            pl.BlockSpec((3, Ls, L), lambda i: (0, 0, 0)),
            pl.BlockSpec((3, L, L), lambda i: (0, 0, 0)),
            pl.BlockSpec((L, L), lambda i: (0, 0)),
            pl.BlockSpec((7, L), lambda i: (0, 0)),
        ],
        out_specs=pl.BlockSpec((Rr, L), lambda i: (0, 0)),
        scratch_shapes=[
            pltpu.VMEM((N, H2 + 2, L), _MXU_DTYPE),    # y-padded upsample rows
            pltpu.VMEM((N, H2 + 2, L), _MXU_DTYPE),    # y-padded conv1 output rows
        ],
        compiler_params=pltpu.CompilerParams(
            dimension_semantics=("arbitrary",),
            vmem_limit_bytes=32 * 1024 * 1024),
        cost_estimate=pl.CostEstimate(flops=int(flops), transcendentals=2 * L,
                                      bytes_accessed=int(bytes_accessed)),
    )(x2d, skip_pad, upw, t1u, t1s, t2, gmat, prm)

    out = out2d.reshape(N, H2, W2, Co)
    return jnp.transpose(out, (0, 3, 1, 2))                     # back to NCHW


# --------------------------- pure-JAX reference ------------------------------ #

def _reference_forward(x_nchw, skip_nchw, p):
    x = jnp.transpose(x_nchw, (0, 2, 3, 1)).astype(jnp.float32)
    skip = jnp.transpose(skip_nchw, (0, 2, 3, 1)).astype(jnp.float32)
    N, H, W, Ci = x.shape
    Co = p["up_b"].shape[0]
    t = jnp.einsum("nhwi,iokl->nhkwlo", x, p["up_w"],
                   precision=lax.Precision.HIGHEST)
    up = t.reshape(N, 2 * H, 2 * W, Co) + p["up_b"]
    cat = jnp.concatenate([up, skip], axis=-1)

    def cbr(inp, w_oihw, b, g, bt):
        w_hwio = jnp.transpose(w_oihw, (2, 3, 1, 0))
        y = lax.conv_general_dilated(inp, w_hwio, (1, 1), "SAME",
                                     dimension_numbers=("NHWC", "HWIO", "NHWC"),
                                     precision=lax.Precision.HIGHEST) + b
        m = jnp.mean(y, axis=(0, 1, 2), keepdims=True)
        v = jnp.mean((y - m) ** 2, axis=(0, 1, 2), keepdims=True)
        y = (y - m) * lax.rsqrt(v + BN_EPS) * g + bt
        return jnp.maximum(y, 0.0)

    h = cbr(cat, p["w1"], p["b1"], p["g1"], p["beta1"])
    h = cbr(h, p["w2"], p["b2"], p["g2"], p["beta2"])
    return jnp.transpose(h, (0, 3, 1, 2))


# ---------------------------------- main ------------------------------------- #

if __name__ == "__main__":
    in_c, out_c = 8, 8
    N, H, W = 2, 8, 8

    key = jax.random.PRNGKey(0)
    k = jax.random.split(key, 10)
    params = {
        # ConvTranspose2d weight layout (in_c, out_c, kH, kW); Conv2d (out_c, in_c, kH, kW)
        "up_w": jax.random.normal(k[0], (in_c, out_c, 2, 2), jnp.float32) / jnp.sqrt(in_c * 4.0),
        "up_b": 0.1 * jax.random.normal(k[1], (out_c,), jnp.float32),
        "w1": jax.random.normal(k[2], (out_c, 2 * out_c, 3, 3), jnp.float32) / jnp.sqrt(2 * out_c * 9.0),
        "b1": 0.1 * jax.random.normal(k[3], (out_c,), jnp.float32),
        "g1": jnp.ones((out_c,), jnp.float32),      # BatchNorm default init
        "beta1": jnp.zeros((out_c,), jnp.float32),
        "w2": jax.random.normal(k[4], (out_c, out_c, 3, 3), jnp.float32) / jnp.sqrt(out_c * 9.0),
        "b2": 0.1 * jax.random.normal(k[5], (out_c,), jnp.float32),
        "g2": jnp.ones((out_c,), jnp.float32),
        "beta2": jnp.zeros((out_c,), jnp.float32),
    }

    x = jax.random.normal(k[6], (N, in_c, H, W), jnp.float32)               # NCHW
    skip = jax.random.normal(k[7], (N, out_c, 2 * H, 2 * W), jnp.float32)   # NCHW

    fwd = jax.jit(decoder_block_forward)
    out = jax.block_until_ready(fwd(x, skip, params))
    assert out.shape == (N, out_c, 2 * H, 2 * W), out.shape

    ref = jax.block_until_ready(_reference_forward(x, skip, params))
    maxdiff = float(jnp.max(jnp.abs(out - ref)))
    # bf16 MXU operands (f32 accumulation) vs HIGHEST-precision f32 reference on
    # BN-normalized O(1) outputs -> allow 5e-2 absolute deviation.
    if maxdiff > 5e-2:
        raise AssertionError(f"mismatch vs pure-JAX reference: max|diff|={maxdiff}")

    # TODO(synk): BatchNorm running-stat buffer updates (training-time side effect)
    # are not modeled; they do not affect the forward output.
    print("KERNEL_OK")
</pallas_src>

<mosaic_0001>
module attributes {stable_mosaic.version = 11 : i64} {
  func.func @_decoder_block_kernel(%arg0: i32, %arg1: memref<16x64xbf16, #tpu.memory_space<vmem>>, %arg2: memref<2x18x128xbf16, #tpu.memory_space<vmem>>, %arg3: memref<2x64x128xbf16, #tpu.memory_space<vmem>>, %arg4: memref<3x128x128xbf16, #tpu.memory_space<vmem>>, %arg5: memref<3x128x128xbf16, #tpu.memory_space<vmem>>, %arg6: memref<3x128x128xbf16, #tpu.memory_space<vmem>>, %arg7: memref<128x128xf32, #tpu.memory_space<vmem>>, %arg8: memref<7x128xf32, #tpu.memory_space<vmem>>, %arg9: memref<32x128xf32, #tpu.memory_space<vmem>>, %arg10: memref<2x18x128xbf16, #tpu.memory_space<vmem>>, %arg11: memref<2x18x128xbf16, #tpu.memory_space<vmem>>) attributes {dimension_semantics = [#tpu.dimension_semantics<arbitrary>], iteration_bounds = array<i64: 1>, scalar_prefetch = 0 : i64, scratch_operands = 2 : i64, tpu.core_type = #tpu.core_type<tc>, window_params = [{pipeline_mode = #tpu.pipeline_mode<synchronous>, transform_indices = @transform_0, window_bounds = array<i64: 16, 64>}, {pipeline_mode = #tpu.pipeline_mode<synchronous>, transform_indices = @transform_1, window_bounds = array<i64: 2, 18, 128>}, {pipeline_mode = #tpu.pipeline_mode<synchronous>, transform_indices = @transform_2, window_bounds = array<i64: 2, 64, 128>}, {pipeline_mode = #tpu.pipeline_mode<synchronous>, transform_indices = @transform_3, window_bounds = array<i64: 3, 128, 128>}, {pipeline_mode = #tpu.pipeline_mode<synchronous>, transform_indices = @transform_4, window_bounds = array<i64: 3, 128, 128>}, {pipeline_mode = #tpu.pipeline_mode<synchronous>, transform_indices = @transform_5, window_bounds = array<i64: 3, 128, 128>}, {pipeline_mode = #tpu.pipeline_mode<synchronous>, transform_indices = @transform_6, window_bounds = array<i64: 128, 128>}, {pipeline_mode = #tpu.pipeline_mode<synchronous>, transform_indices = @transform_7, window_bounds = array<i64: 7, 128>}, {pipeline_mode = #tpu.pipeline_mode<synchronous>, transform_indices = @transform_8, window_bounds = array<i64: 32, 128>}]} {
    %c0 = arith.constant 0 : index
    %c0_0 = arith.constant 0 : index
    %0 = vector.load %arg8[%c0, %c0_0] : memref<7x128xf32, #tpu.memory_space<vmem>>, vector<7x128xf32>
    %c0_1 = arith.constant 0 : index
    %c0_2 = arith.constant 0 : index
    %1 = vector.load %arg7[%c0_1, %c0_2] : memref<128x128xf32, #tpu.memory_space<vmem>>, vector<128x128xf32>
    %c0_3 = arith.constant 0 : index
    %c0_4 = arith.constant 0 : index
    %2 = vector.load %arg1[%c0_3, %c0_4] : memref<16x64xbf16, #tpu.memory_space<vmem>>, vector<16x64xbf16>
    %c0_5 = arith.constant 0 : index
    %c0_6 = arith.constant 0 : index
    %c0_7 = arith.constant 0 : index
    %3 = vector.load %arg3[%c0_5, %c0_6, %c0_7] : memref<2x64x128xbf16, #tpu.memory_space<vmem>>, vector<1x64x128xbf16>
    %4 = vector.shape_cast %3 : vector<1x64x128xbf16> to vector<64x128xbf16>
    %cst = arith.constant dense<0.000000e+00> : vector<16x128xf32>
    %5 = tpu.matmul %2, %4, %cst {dimension_numbers = #tpu.dot_dimension_numbers<[1], [0], [0], [1], [0, 0, 1, 1], [], []>} : vector<16x64xbf16>, vector<64x128xbf16>, vector<16x128xf32> -> vector<16x128xf32>
    %6 = vector.extract_strided_slice %0 {offsets = [0, 0], sizes = [1, 128], strides = [1, 1]} : vector<7x128xf32> to vector<1x128xf32>
    %7 = vector.broadcast %6 : vector<1x128xf32> to vector<16x128xf32>
    %8 = arith.addf %5, %7 : vector<16x128xf32>
    %c0_8 = arith.constant 0 : index
    %c0_9 = arith.constant 0 : index
    %9 = vector.load %arg1[%c0_8, %c0_9] : memref<16x64xbf16, #tpu.memory_space<vmem>>, vector<16x64xbf16>
    %c1 = arith.constant 1 : index
    %c0_10 = arith.constant 0 : index
    %c0_11 = arith.constant 0 : index
    %10 = vector.load %arg3[%c1, %c0_10, %c0_11] : memref<2x64x128xbf16, #tpu.memory_space<vmem>>, vector<1x64x128xbf16>
    %11 = vector.shape_cast %10 : vector<1x64x128xbf16> to vector<64x128xbf16>
    %cst_12 = arith.constant dense<0.000000e+00> : vector<16x128xf32>
    %12 = tpu.matmul %9, %11, %cst_12 {dimension_numbers = #tpu.dot_dimension_numbers<[1], [0], [0], [1], [0, 0, 1, 1], [], []>} : vector<16x64xbf16>, vector<64x128xbf16>, vector<16x128xf32> -> vector<16x128xf32>
    %13 = vector.extract_strided_slice %0 {offsets = [0, 0], sizes = [1, 128], strides = [1, 1]} : vector<7x128xf32> to vector<1x128xf32>
    %14 = vector.broadcast %13 : vector<1x128xf32> to vector<16x128xf32>
    %15 = arith.addf %12, %14 : vector<16x128xf32>
    %16 = vector.shape_cast %8 : vector<16x128xf32> to vector<2x8x128xf32>
    %17 = vector.shape_cast %15 : vector<16x128xf32> to vector<2x8x128xf32>
    %18 = vector.shape_cast %16 : vector<2x8x128xf32> to vector<2x8x1x128xf32>
    %19 = vector.shape_cast %17 : vector<2x8x128xf32> to vector<2x8x1x128xf32>
    %20 = tpu.concatenate %18, %19 in 2 : vector<2x8x1x128xf32>, vector<2x8x1x128xf32> -> vector<2x8x2x128xf32>
    %21 = vector.shape_cast %20 : vector<2x8x2x128xf32> to vector<2x16x128xf32>
    %cst_13 = arith.constant 0.000000e+00 : bf16
    %22 = vector.broadcast %cst_13 : bf16 to vector<2x1x128xbf16>
    %c0_14 = arith.constant 0 : index
    %c0_15 = arith.constant 0 : index
    %c0_16 = arith.constant 0 : index
    %23 = vector.load %arg10[%c0_14, %c0_15, %c0_16] : memref<2x18x128xbf16, #tpu.memory_space<vmem>>, vector<2x1x128xbf16>
    tpu.vector_store %arg10[%c0_14, %c0_15, %c0_16], %22 {strides = array<i32>} : memref<2x18x128xbf16, #tpu.memory_space<vmem>>, vector<2x1x128xbf16>,
    %c0_17 = arith.constant 0 : index
    %c17 = arith.constant 17 : index
    %c0_18 = arith.constant 0 : index
    %24 = vector.load %arg10[%c0_17, %c17, %c0_18] : memref<2x18x128xbf16, #tpu.memory_space<vmem>>, vector<2x1x128xbf16>
    tpu.vector_store %arg10[%c0_17, %c17, %c0_18], %22 {strides = array<i32>} : memref<2x18x128xbf16, #tpu.memory_space<vmem>>, vector<2x1x128xbf16>,
    %25 = arith.truncf %21 : vector<2x16x128xf32> to vector<2x16x128xbf16>
    %c0_19 = arith.constant 0 : index
    %c1_20 = arith.constant 1 : index
    %c0_21 = arith.constant 0 : index
    %26 = vector.load %arg10[%c0_19, %c1_20, %c0_21] : memref<2x18x128xbf16, #tpu.memory_space<vmem>>, vector<2x16x128xbf16>
    tpu.vector_store %arg10[%c0_19, %c1_20, %c0_21], %25 {strides = array<i32>} : memref<2x18x128xbf16, #tpu.memory_space<vmem>>, vector<2x16x128xbf16>,
    %c0_22 = arith.constant 0 : index
    %c0_23 = arith.constant 0 : index
    %c0_24 = arith.constant 0 : index
    %27 = vector.load %arg10[%c0_22, %c0_23, %c0_24] : memref<2x18x128xbf16, #tpu.memory_space<vmem>>, vector<2x16x128xbf16>
    %28 = vector.shape_cast %27 : vector<2x16x128xbf16> to vector<32x128xbf16>
    %c0_25 = arith.constant 0 : index
    %c0_26 = arith.constant 0 : index
    %c0_27 = arith.constant 0 : index
    %29 = vector.load %arg4[%c0_25, %c0_26, %c0_27] : memref<3x128x128xbf16, #tpu.memory_space<vmem>>, vector<1x128x128xbf16>
    %30 = vector.shape_cast %29 : vector<1x128x128xbf16> to vector<128x128xbf16>
    %cst_28 = arith.constant dense<0.000000e+00> : vector<32x128xf32>
    %31 = tpu.matmul %28, %30, %cst_28 {dimension_numbers = #tpu.dot_dimension_numbers<[1], [0], [0], [1], [0, 0, 1, 1], [], []>} : vector<32x128xbf16>, vector<128x128xbf16>, vector<32x128xf32> -> vector<32x128xf32>
    %c0_29 = arith.constant 0 : index
    %c1_30 = arith.constant 1 : index
    %c0_31 = arith.constant 0 : index
    %32 = vector.load %arg10[%c0_29, %c1_30, %c0_31] : memref<2x18x128xbf16, #tpu.memory_space<vmem>>, vector<2x16x128xbf16>
    %33 = vector.shape_cast %32 : vector<2x16x128xbf16> to vector<32x128xbf16>
    %c1_32 = arith.constant 1 : index
    %c0_33 = arith.constant 0 : index
    %c0_34 = arith.constant 0 : index
    %34 = vector.load %arg4[%c1_32, %c0_33, %c0_34] : memref<3x128x128xbf16, #tpu.memory_space<vmem>>, vector<1x128x128xbf16>
    %35 = vector.shape_cast %34 : vector<1x128x128xbf16> to vector<128x128xbf16>
    %cst_35 = arith.constant dense<0.000000e+00> : vector<32x128xf32>
    %36 = tpu.matmul %33, %35, %cst_35 {dimension_numbers = #tpu.dot_dimension_numbers<[1], [0], [0], [1], [0, 0, 1, 1], [], []>} : vector<32x128xbf16>, vector<128x128xbf16>, vector<32x128xf32> -> vector<32x128xf32>
    %37 = arith.addf %31, %36 : vector<32x128xf32>
    %c0_36 = arith.constant 0 : index
    %c2 = arith.constant 2 : index
    %c0_37 = arith.constant 0 : index
    %38 = vector.load %arg10[%c0_36, %c2, %c0_37] : memref<2x18x128xbf16, #tpu.memory_space<vmem>>, vector<2x16x128xbf16>
    %39 = vector.shape_cast %38 : vector<2x16x128xbf16> to vector<32x128xbf16>
    %c2_38 = arith.constant 2 : index
    %c0_39 = arith.constant 0 : index
    %c0_40 = arith.constant 0 : index
    %40 = vector.load %arg4[%c2_38, %c0_39, %c0_40] : memref<3x128x128xbf16, #tpu.memory_space<vmem>>, vector<1x128x128xbf16>
    %41 = vector.shape_cast %40 : vector<1x128x128xbf16> to vector<128x128xbf16>
    %cst_41 = arith.constant dense<0.000000e+00> : vector<32x128xf32>
    %42 = tpu.matmul %39, %41, %cst_41 {dimension_numbers = #tpu.dot_dimension_numbers<[1], [0], [0], [1], [0, 0, 1, 1], [], []>} : vector<32x128xbf16>, vector<128x128xbf16>, vector<32x128xf32> -> vector<32x128xf32>
    %43 = arith.addf %37, %42 : vector<32x128xf32>
    %c0_42 = arith.constant 0 : index
    %c0_43 = arith.constant 0 : index
    %c0_44 = arith.constant 0 : index
    %44 = vector.load %arg2[%c0_42, %c0_43, %c0_44] : memref<2x18x128xbf16, #tpu.memory_space<vmem>>, vector<2x16x128xbf16>
    %45 = vector.shape_cast %44 : vector<2x16x128xbf16> to vector<32x128xbf16>
    %c0_45 = arith.constant 0 : index
    %c0_46 = arith.constant 0 : index
    %c0_47 = arith.constant 0 : index
    %46 = vector.load %arg5[%c0_45, %c0_46, %c0_47] : memref<3x128x128xbf16, #tpu.memory_space<vmem>>, vector<1x128x128xbf16>
    %47 = vector.shape_cast %46 : vector<1x128x128xbf16> to vector<128x128xbf16>
    %cst_48 = arith.constant dense<0.000000e+00> : vector<32x128xf32>
    %48 = tpu.matmul %45, %47, %cst_48 {dimension_numbers = #tpu.dot_dimension_numbers<[1], [0], [0], [1], [0, 0, 1, 1], [], []>} : vector<32x128xbf16>, vector<128x128xbf16>, vector<32x128xf32> -> vector<32x128xf32>
    %c0_49 = arith.constant 0 : index
    %c1_50 = arith.constant 1 : index
    %c0_51 = arith.constant 0 : index
    %49 = vector.load %arg2[%c0_49, %c1_50, %c0_51] : memref<2x18x128xbf16, #tpu.memory_space<vmem>>, vector<2x16x128xbf16>
    %50 = vector.shape_cast %49 : vector<2x16x128xbf16> to vector<32x128xbf16>
    %c1_52 = arith.constant 1 : index
    %c0_53 = arith.constant 0 : index
    %c0_54 = arith.constant 0 : index
    %51 = vector.load %arg5[%c1_52, %c0_53, %c0_54] : memref<3x128x128xbf16, #tpu.memory_space<vmem>>, vector<1x128x128xbf16>
    %52 = vector.shape_cast %51 : vector<1x128x128xbf16> to vector<128x128xbf16>
    %cst_55 = arith.constant dense<0.000000e+00> : vector<32x128xf32>
    %53 = tpu.matmul %50, %52, %cst_55 {dimension_numbers = #tpu.dot_dimension_numbers<[1], [0], [0], [1], [0, 0, 1, 1], [], []>} : vector<32x128xbf16>, vector<128x128xbf16>, vector<32x128xf32> -> vector<32x128xf32>
    %54 = arith.addf %48, %53 : vector<32x128xf32>
    %c0_56 = arith.constant 0 : index
    %c2_57 = arith.constant 2 : index
    %c0_58 = arith.constant 0 : index
    %55 = vector.load %arg2[%c0_56, %c2_57, %c0_58] : memref<2x18x128xbf16, #tpu.memory_space<vmem>>, vector<2x16x128xbf16>
    %56 = vector.shape_cast %55 : vector<2x16x128xbf16> to vector<32x128xbf16>
    %c2_59 = arith.constant 2 : index
    %c0_60 = arith.constant 0 : index
    %c0_61 = arith.constant 0 : index
    %57 = vector.load %arg5[%c2_59, %c0_60, %c0_61] : memref<3x128x128xbf16, #tpu.memory_space<vmem>>, vector<1x128x128xbf16>
    %58 = vector.shape_cast %57 : vector<1x128x128xbf16> to vector<128x128xbf16>
    %cst_62 = arith.constant dense<0.000000e+00> : vector<32x128xf32>
    %59 = tpu.matmul %56, %58, %cst_62 {dimension_numbers = #tpu.dot_dimension_numbers<[1], [0], [0], [1], [0, 0, 1, 1], [], []>} : vector<32x128xbf16>, vector<128x128xbf16>, vector<32x128xf32> -> vector<32x128xf32>
    %60 = arith.addf %54, %59 : vector<32x128xf32>
    %61 = arith.addf %43, %60 : vector<32x128xf32>
    %62 = vector.extract_strided_slice %0 {offsets = [1, 0], sizes = [1, 128], strides = [1, 1]} : vector<7x128xf32> to vector<1x128xf32>
    %63 = vector.broadcast %62 : vector<1x128xf32> to vector<32x128xf32>
    %64 = arith.addf %61, %63 : vector<32x128xf32>
    %65 = vector.extract_strided_slice %0 {offsets = [2, 0], sizes = [1, 128], strides = [1, 1]} : vector<7x128xf32> to vector<1x128xf32>
    %66 = vector.extract_strided_slice %0 {offsets = [3, 0], sizes = [1, 128], strides = [1, 1]} : vector<7x128xf32> to vector<1x128xf32>
    %cst_63 = arith.constant dense<0.000000e+00> : vector<32x128xf32>
    %67 = tpu.matmul %64, %1, %cst_63 {dimension_numbers = #tpu.dot_dimension_numbers<[1], [0], [0], [1], [0, 0, 1, 1], [], []>} : vector<32x128xf32>, vector<128x128xf32>, vector<32x128xf32> -> vector<32x128xf32>
    %cst_64 = arith.constant dense<0.000000e+00> : vector<128xf32>
    %68 = vector.multi_reduction <add>, %67, %cst_64 [0] : vector<32x128xf32> to vector<128xf32>
    %69 = vector.shape_cast %68 : vector<128xf32> to vector<1x128xf32>
    %cst_65 = arith.constant 0.001953125 : f32
    %70 = vector.broadcast %cst_65 : f32 to vector<1x128xf32>
    %71 = arith.mulf %69, %70 : vector<1x128xf32>
    %72 = vector.broadcast %71 : vector<1x128xf32> to vector<32x128xf32>
    %73 = arith.subf %64, %72 : vector<32x128xf32>
    %74 = arith.mulf %73, %73 : vector<32x128xf32>
    %cst_66 = arith.constant dense<0.000000e+00> : vector<32x128xf32>
    %75 = tpu.matmul %74, %1, %cst_66 {dimension_numbers = #tpu.dot_dimension_numbers<[1], [0], [0], [1], [0, 0, 1, 1], [], []>} : vector<32x128xf32>, vector<128x128xf32>, vector<32x128xf32> -> vector<32x128xf32>
    %cst_67 = arith.constant dense<0.000000e+00> : vector<128xf32>
    %76 = vector.multi_reduction <add>, %75, %cst_67 [0] : vector<32x128xf32> to vector<128xf32>
    %77 = vector.shape_cast %76 : vector<128xf32> to vector<1x128xf32>
    %cst_68 = arith.constant 0.001953125 : f32
    %78 = vector.broadcast %cst_68 : f32 to vector<1x128xf32>
    %79 = arith.mulf %77, %78 : vector<1x128xf32>
    %cst_69 = arith.constant 9.99999974E-6 : f32
    %80 = vector.broadcast %cst_69 : f32 to vector<1x128xf32>
    %81 = arith.addf %79, %80 : vector<1x128xf32>
    %82 = math.rsqrt %81 : vector<1x128xf32>
    %83 = vector.broadcast %82 : vector<1x128xf32> to vector<32x128xf32>
    %84 = arith.mulf %73, %83 : vector<32x128xf32>
    %85 = vector.broadcast %65 : vector<1x128xf32> to vector<32x128xf32>
    %86 = arith.mulf %84, %85 : vector<32x128xf32>
    %87 = vector.broadcast %66 : vector<1x128xf32> to vector<32x128xf32>
    %88 = arith.addf %86, %87 : vector<32x128xf32>
    %cst_70 = arith.constant 0.000000e+00 : f32
    %89 = vector.broadcast %cst_70 : f32 to vector<32x128xf32>
    %90 = arith.maximumf %88, %89 : vector<32x128xf32>
    %c0_71 = arith.constant 0 : index
    %c0_72 = arith.constant 0 : index
    %c0_73 = arith.constant 0 : index
    %91 = vector.load %arg11[%c0_71, %c0_72, %c0_73] : memref<2x18x128xbf16, #tpu.memory_space<vmem>>, vector<2x1x128xbf16>
    tpu.vector_store %arg11[%c0_71, %c0_72, %c0_73], %22 {strides = array<i32>} : memref<2x18x128xbf16, #tpu.memory_space<vmem>>, vector<2x1x128xbf16>,
    %c0_74 = arith.constant 0 : index
    %c17_75 = arith.constant 17 : index
    %c0_76 = arith.constant 0 : index
    %92 = vector.load %arg11[%c0_74, %c17_75, %c0_76] : memref<2x18x128xbf16, #tpu.memory_space<vmem>>, vector<2x1x128xbf16>
    tpu.vector_store %arg11[%c0_74, %c17_75, %c0_76], %22 {strides = array<i32>} : memref<2x18x128xbf16, #tpu.memory_space<vmem>>, vector<2x1x128xbf16>,
    %93 = vector.shape_cast %90 : vector<32x128xf32> to vector<2x16x128xf32>
    %94 = arith.truncf %93 : vector<2x16x128xf32> to vector<2x16x128xbf16>
    %c0_77 = arith.constant 0 : index
    %c1_78 = arith.constant 1 : index
    %c0_79 = arith.constant 0 : index
    %95 = vector.load %arg11[%c0_77, %c1_78, %c0_79] : memref<2x18x128xbf16, #tpu.memory_space<vmem>>, vector<2x16x128xbf16>
    tpu.vector_store %arg11[%c0_77, %c1_78, %c0_79], %94 {strides = array<i32>} : memref<2x18x128xbf16, #tpu.memory_space<vmem>>, vector<2x16x128xbf16>,
    %c0_80 = arith.constant 0 : index
    %c0_81 = arith.constant 0 : index
    %c0_82 = arith.constant 0 : index
    %96 = vector.load %arg11[%c0_80, %c0_81, %c0_82] : memref<2x18x128xbf16, #tpu.memory_space<vmem>>, vector<2x16x128xbf16>
    %97 = vector.shape_cast %96 : vector<2x16x128xbf16> to vector<32x128xbf16>
    %c0_83 = arith.constant 0 : index
    %c0_84 = arith.constant 0 : index
    %c0_85 = arith.constant 0 : index
    %98 = vector.load %arg6[%c0_83, %c0_84, %c0_85] : memref<3x128x128xbf16, #tpu.memory_space<vmem>>, vector<1x128x128xbf16>
    %99 = vector.shape_cast %98 : vector<1x128x128xbf16> to vector<128x128xbf16>
    %cst_86 = arith.constant dense<0.000000e+00> : vector<32x128xf32>
    %100 = tpu.matmul %97, %99, %cst_86 {dimension_numbers = #tpu.dot_dimension_numbers<[1], [0], [0], [1], [0, 0, 1, 1], [], []>} : vector<32x128xbf16>, vector<128x128xbf16>, vector<32x128xf32> -> vector<32x128xf32>
    %c0_87 = arith.constant 0 : index
    %c1_88 = arith.constant 1 : index
    %c0_89 = arith.constant 0 : index
    %101 = vector.load %arg11[%c0_87, %c1_88, %c0_89] : memref<2x18x128xbf16, #tpu.memory_space<vmem>>, vector<2x16x128xbf16>
    %102 = vector.shape_cast %101 : vector<2x16x128xbf16> to vector<32x128xbf16>
    %c1_90 = arith.constant 1 : index
    %c0_91 = arith.constant 0 : index
    %c0_92 = arith.constant 0 : index
    %103 = vector.load %arg6[%c1_90, %c0_91, %c0_92] : memref<3x128x128xbf16, #tpu.memory_space<vmem>>, vector<1x128x128xbf16>
    %104 = vector.shape_cast %103 : vector<1x128x128xbf16> to vector<128x128xbf16>
    %cst_93 = arith.constant dense<0.000000e+00> : vector<32x128xf32>
    %105 = tpu.matmul %102, %104, %cst_93 {dimension_numbers = #tpu.dot_dimension_numbers<[1], [0], [0], [1], [0, 0, 1, 1], [], []>} : vector<32x128xbf16>, vector<128x128xbf16>, vector<32x128xf32> -> vector<32x128xf32>
    %106 = arith.addf %100, %105 : vector<32x128xf32>
    %c0_94 = arith.constant 0 : index
    %c2_95 = arith.constant 2 : index
    %c0_96 = arith.constant 0 : index
    %107 = vector.load %arg11[%c0_94, %c2_95, %c0_96] : memref<2x18x128xbf16, #tpu.memory_space<vmem>>, vector<2x16x128xbf16>
    %108 = vector.shape_cast %107 : vector<2x16x128xbf16> to vector<32x128xbf16>
    %c2_97 = arith.constant 2 : index
    %c0_98 = arith.constant 0 : index
    %c0_99 = arith.constant 0 : index
    %109 = vector.load %arg6[%c2_97, %c0_98, %c0_99] : memref<3x128x128xbf16, #tpu.memory_space<vmem>>, vector<1x128x128xbf16>
    %110 = vector.shape_cast %109 : vector<1x128x128xbf16> to vector<128x128xbf16>
    %cst_100 = arith.constant dense<0.000000e+00> : vector<32x128xf32>
    %111 = tpu.matmul %108, %110, %cst_100 {dimension_numbers = #tpu.dot_dimension_numbers<[1], [0], [0], [1], [0, 0, 1, 1], [], []>} : vector<32x128xbf16>, vector<128x128xbf16>, vector<32x128xf32> -> vector<32x128xf32>
    %112 = arith.addf %106, %111 : vector<32x128xf32>
    %113 = vector.extract_strided_slice %0 {offsets = [4, 0], sizes = [1, 128], strides = [1, 1]} : vector<7x128xf32> to vector<1x128xf32>
    %114 = vector.broadcast %113 : vector<1x128xf32> to vector<32x128xf32>
    %115 = arith.addf %112, %114 : vector<32x128xf32>
    %116 = vector.extract_strided_slice %0 {offsets = [5, 0], sizes = [1, 128], strides = [1, 1]} : vector<7x128xf32> to vector<1x128xf32>
    %117 = vector.extract_strided_slice %0 {offsets = [6, 0], sizes = [1, 128], strides = [1, 1]} : vector<7x128xf32> to vector<1x128xf32>
    %cst_101 = arith.constant dense<0.000000e+00> : vector<32x128xf32>
    %118 = tpu.matmul %115, %1, %cst_101 {dimension_numbers = #tpu.dot_dimension_numbers<[1], [0], [0], [1], [0, 0, 1, 1], [], []>} : vector<32x128xf32>, vector<128x128xf32>, vector<32x128xf32> -> vector<32x128xf32>
    %cst_102 = arith.constant dense<0.000000e+00> : vector<128xf32>
    %119 = vector.multi_reduction <add>, %118, %cst_102 [0] : vector<32x128xf32> to vector<128xf32>
    %120 = vector.shape_cast %119 : vector<128xf32> to vector<1x128xf32>
    %cst_103 = arith.constant 0.001953125 : f32
    %121 = vector.broadcast %cst_103 : f32 to vector<1x128xf32>
    %122 = arith.mulf %120, %121 : vector<1x128xf32>
    %123 = vector.broadcast %122 : vector<1x128xf32> to vector<32x128xf32>
    %124 = arith.subf %115, %123 : vector<32x128xf32>
    %125 = arith.mulf %124, %124 : vector<32x128xf32>
    %cst_104 = arith.constant dense<0.000000e+00> : vector<32x128xf32>
    %126 = tpu.matmul %125, %1, %cst_104 {dimension_numbers = #tpu.dot_dimension_numbers<[1], [0], [0], [1], [0, 0, 1, 1], [], []>} : vector<32x128xf32>, vector<128x128xf32>, vector<32x128xf32> -> vector<32x128xf32>
    %cst_105 = arith.constant dense<0.000000e+00> : vector<128xf32>
    %127 = vector.multi_reduction <add>, %126, %cst_105 [0] : vector<32x128xf32> to vector<128xf32>
    %128 = vector.shape_cast %127 : vector<128xf32> to vector<1x128xf32>
    %cst_106 = arith.constant 0.001953125 : f32
    %129 = vector.broadcast %cst_106 : f32 to vector<1x128xf32>
    %130 = arith.mulf %128, %129 : vector<1x128xf32>
    %cst_107 = arith.constant 9.99999974E-6 : f32
    %131 = vector.broadcast %cst_107 : f32 to vector<1x128xf32>
    %132 = arith.addf %130, %131 : vector<1x128xf32>
    %133 = math.rsqrt %132 : vector<1x128xf32>
    %134 = vector.broadcast %133 : vector<1x128xf32> to vector<32x128xf32>
    %135 = arith.mulf %124, %134 : vector<32x128xf32>
    %136 = vector.broadcast %116 : vector<1x128xf32> to vector<32x128xf32>
    %137 = arith.mulf %135, %136 : vector<32x128xf32>
    %138 = vector.broadcast %117 : vector<1x128xf32> to vector<32x128xf32>
    %139 = arith.addf %137, %138 : vector<32x128xf32>
    %cst_108 = arith.constant 0.000000e+00 : f32
    %140 = vector.broadcast %cst_108 : f32 to vector<32x128xf32>
    %141 = arith.maximumf %139, %140 : vector<32x128xf32>
    %c0_109 = arith.constant 0 : index
    %c0_110 = arith.constant 0 : index
    %142 = vector.load %arg9[%c0_109, %c0_110] : memref<32x128xf32, #tpu.memory_space<vmem>>, vector<32x128xf32>
    tpu.vector_store %arg9[%c0_109, %c0_110], %141 {strides = array<i32>} : memref<32x128xf32, #tpu.memory_space<vmem>>, vector<32x128xf32>,
    return
  }
  func.func @transform_0(%arg0: i32) -> (i32, i32) {
    %c0_i32 = arith.constant 0 : i32
    %c0_i32_0 = arith.constant 0 : i32
    %c0_i32_1 = arith.constant 0 : i32
    return %c0_i32, %c0_i32_0 : i32, i32
  }
  func.func @transform_1(%arg0: i32) -> (i32, i32, i32) {
    %c0_i32 = arith.constant 0 : i32
    %c0_i32_0 = arith.constant 0 : i32
    %c0_i32_1 = arith.constant 0 : i32
    %c0_i32_2 = arith.constant 0 : i32
    return %c0_i32, %c0_i32_0, %c0_i32_1 : i32, i32, i32
  }
  func.func @transform_2(%arg0: i32) -> (i32, i32, i32) {
    %c0_i32 = arith.constant 0 : i32
    %c0_i32_0 = arith.constant 0 : i32
    %c0_i32_1 = arith.constant 0 : i32
    %c0_i32_2 = arith.constant 0 : i32
    return %c0_i32, %c0_i32_0, %c0_i32_1 : i32, i32, i32
  }
  func.func @transform_3(%arg0: i32) -> (i32, i32, i32) {
    %c0_i32 = arith.constant 0 : i32
    %c0_i32_0 = arith.constant 0 : i32
    %c0_i32_1 = arith.constant 0 : i32
    %c0_i32_2 = arith.constant 0 : i32
    return %c0_i32, %c0_i32_0, %c0_i32_1 : i32, i32, i32
  }
  func.func @transform_4(%arg0: i32) -> (i32, i32, i32) {
    %c0_i32 = arith.constant 0 : i32
    %c0_i32_0 = arith.constant 0 : i32
    %c0_i32_1 = arith.constant 0 : i32
    %c0_i32_2 = arith.constant 0 : i32
    return %c0_i32, %c0_i32_0, %c0_i32_1 : i32, i32, i32
  }
  func.func @transform_5(%arg0: i32) -> (i32, i32, i32) {
    %c0_i32 = arith.constant 0 : i32
    %c0_i32_0 = arith.constant 0 : i32
    %c0_i32_1 = arith.constant 0 : i32
    %c0_i32_2 = arith.constant 0 : i32
    return %c0_i32, %c0_i32_0, %c0_i32_1 : i32, i32, i32
  }
  func.func @transform_6(%arg0: i32) -> (i32, i32) {
    %c0_i32 = arith.constant 0 : i32
    %c0_i32_0 = arith.constant 0 : i32
    %c0_i32_1 = arith.constant 0 : i32
    return %c0_i32, %c0_i32_0 : i32, i32
  }
  func.func @transform_7(%arg0: i32) -> (i32, i32) {
    %c0_i32 = arith.constant 0 : i32
    %c0_i32_0 = arith.constant 0 : i32
    %c0_i32_1 = arith.constant 0 : i32
    return %c0_i32, %c0_i32_0 : i32, i32
  }
  func.func @transform_8(%arg0: i32) -> (i32, i32) {
    %c0_i32 = arith.constant 0 : i32
    %c0_i32_0 = arith.constant 0 : i32
    %c0_i32_1 = arith.constant 0 : i32
    return %c0_i32, %c0_i32_0 : i32, i32
  }
}

</mosaic_0001>

<bundles_post_ra>
// kernel: tile.42
= control target key start
LH: loop header
LB: loop body
LE: loop exit
PB: predicated region body
PF: predicated region fallthrough
CT: control target
= control target key end

     0   :  { %s28_s0 = inlined_call_operand.vmem [shape: f32[8], index: 0, kind: input, shape index: {}]   ;;  %s29_s1 = inlined_call_operand.vmem [shape: f32[16,8], index: 1, kind: output, shape index: {}]  }
   0x1   :  { %v4_v0 = vld [vmem:[%s28_s0] ss:$0 sm:$0xff] }
   0x2   :  { %5 = vst [vmem:[%s29_s1] sm:$0xff] %v4_v0  ;;  %8 = vst [vmem:[%s29_s1 + $0x8] sm:$0xff] %v4_v0 }

// kernel: tile.64
= control target key start
LH: loop header
LB: loop body
LE: loop exit
PB: predicated region body
PF: predicated region fallthrough
CT: control target
= control target key end

     0   :  { %s133_s10 = smov 120   ;;  %s134_s11 = smov 104   ;;  %vm3_vm0 = vcmask 64512   ;;  %vm9_vm1 = vcmask 1048512   ;;  %vm15_vm2 = vcmask 982912   ;;  %vm21_vm3 = vcmask 917312   ;;  %s209_s0 = inlined_call_operand.vmem [shape: f32[16,8], index: 0, kind: input, shape index: {}]   ;;  %s210_s1 = inlined_call_operand.vmem [shape: f32[1,128], index: 1, kind: output, shape index: {}]  }
   0x1   :  { %v103_v0 = vld [vmem:[%s209_s0 + $0xf] sm:$0x1]   ;;  %v105_v1 = vld [vmem:[%s209_s0 + $0xd] sm:$0x1]   ;;  %v104_v2 = vld [vmem:[%s209_s0 + $0xe] sm:$0x1]  }
   0x2   :  { %7 = vrot.lane.b32.xlu0 %v103_v0, %s133_s10  ;;  %19 = vrot.lane.b32.xlu1 %v105_v1, %s134_s11  ;;  %v106_v3 = vld [vmem:[%s209_s0 + $0xc] sm:$0x1]   ;;  %s135_s16 = smov 112   ;;  %s136_s17 = smov 96   ;;  %v107_v4 = vld [vmem:[%s209_s0 + $0xb] sm:$0x1]  }
   0x3   :  { %v108_v5 = vld [vmem:[%s209_s0 + $0xa] sm:$0x1]   ;;  %v2_v6 = vld [vmem:[%s209_s0] sm:$0x1]   ;;  %s137_s24 = smov 88   ;;  %s138_s25 = smov 80  }
   0x4   :  { %4 = vst.msk [vmem:[#allocation0] sm:$0x1] %vm3_vm0, %v2_v6   ;;  %v109_v7 = vld [vmem:[%s209_s0 + $0x9] sm:$0x1]   ;;  %v110_v8 = vld [vmem:[%s209_s0 + $0x8] sm:$0x1]  }
   0x5   :  { %s139_s30 = smov 72   ;;  %s140_s2 = smov 64   ;;  %v111_v9 = vld [vmem:[%s209_s0 + $0x7] sm:$0x1]   ;;  %v112_v10 = vld [vmem:[%s209_s0 + $0x6] sm:$0x1]  }
   0x6   :  { %13 = vrot.lane.b32.xlu0 %v104_v2, %s135_s16  ;;  %25 = vrot.lane.b32.xlu1 %v106_v3, %s136_s17  ;;  %s141_s7 = smov 56   ;;  %s142_s8 = smov 48   ;;  %v113_v11 = vld [vmem:[%s209_s0 + $0x5] sm:$0x1]   ;;  %v114_v12 = vld [vmem:[%s209_s0 + $0x4] sm:$0x1]  }
   0x7   :  { %s143_s13 = smov 40   ;;  %s144_s14 = smov 32   ;;  %v115_v13 = vld [vmem:[%s209_s0 + $0x3] sm:$0x1]   ;;  %v116_v14 = vld [vmem:[%s209_s0 + $0x2] sm:$0x1]  }
   0x8   :  { %s145_s19 = smov 24   ;;  %s146_s20 = smov 16   ;;  %v117_v15 = vld [vmem:[%s209_s0 + $0x1] sm:$0x1]   ;;  %vm27_vm4 = vcmask 851712   ;;  %vm33_vm5 = vcmask 786112  }
   0x9   :  { %s147_s0 = smov 8   ;;  %vm39_vm6 = vcmask 720512   ;;  %vm45_vm7 = vcmask 654912   ;;  %vm51_vm8 = vcmask 589312   ;;  %vm57_vm9 = vcmask 523712  }
   0xa   :  { %31 = vrot.lane.b32.xlu0 %v107_v4, %s137_s24  ;;  %37 = vrot.lane.b32.xlu1 %v108_v5, %s138_s25  ;;  %vm63_vm10 = vcmask 458112   ;;  %vm69_vm11 = vcmask 392512   ;;  %vm75_vm12 = vcmask 326912   ;;  %vm81_vm13 = vcmask 261312  }
   0xb   :  { %vm87_vm14 = vcmask 195712   ;;  %vm93_vm15 = vcmask 130112  }
   0xe   :  { %43 = vrot.lane.b32.xlu0 %v109_v7, %s139_s30  ;;  %49 = vrot.lane.b32.xlu1 %v110_v8, %s140_s2 }
  0x12   :  { %55 = vrot.lane.b32.xlu0 %v111_v9, %s141_s7  ;;  %61 = vrot.lane.b32.xlu1 %v112_v10, %s142_s8 }
  0x16   :  { %67 = vrot.lane.b32.xlu0 %v113_v11, %s143_s13  ;;  %73 = vrot.lane.b32.xlu1 %v114_v12, %s144_s14 }
  0x1a   :  { %79 = vrot.lane.b32.xlu0 %v115_v13, %s145_s19  ;;  %85 = vrot.lane.b32.xlu1 %v116_v14, %s146_s20 }
  0x1e   :  { %91 = vrot.lane.b32.xlu0 %v117_v15, %s147_s0 }
  0x74   :  { %v8_v16 = vpop.permute.xlu0 %7   ;;  %v20_v17 = vpop.permute.xlu1 %19  }
  0x75   :  { %10 = vst.msk [vmem:[#allocation0] sm:$0x1] %vm9_vm1, %v8_v16  }
  0x78   :  { %v14_v18 = vpop.permute.xlu0 %13   ;;  %v26_v19 = vpop.permute.xlu1 %25  }
  0x79   :  { %16 = vst.msk [vmem:[#allocation0] sm:$0x1] %vm15_vm2, %v14_v18  }
  0x7a   :  { %22 = vst.msk [vmem:[#allocation0] sm:$0x1] %vm21_vm3, %v20_v17  }
  0x7b   :  { %28 = vst.msk [vmem:[#allocation0] sm:$0x1] %vm27_vm4, %v26_v19  }
  0x7c   :  { %v32_v20 = vpop.permute.xlu0 %31   ;;  %v38_v21 = vpop.permute.xlu1 %37  }
  0x7d   :  { %34 = vst.msk [vmem:[#allocation0] sm:$0x1] %vm33_vm5, %v32_v20  }
  0x7e   :  { %40 = vst.msk [vmem:[#allocation0] sm:$0x1] %vm39_vm6, %v38_v21  }
  0x80   :  { %v44_v22 = vpop.permute.xlu0 %43   ;;  %v50_v23 = vpop.permute.xlu1 %49  }
  0x81   :  { %46 = vst.msk [vmem:[#allocation0] sm:$0x1] %vm45_vm7, %v44_v22  }
  0x82   :  { %52 = vst.msk [vmem:[#allocation0] sm:$0x1] %vm51_vm8, %v50_v23  }
  0x84   :  { %v56_v24 = vpop.permute.xlu0 %55   ;;  %v62_v25 = vpop.permute.xlu1 %61  }
  0x85   :  { %58 = vst.msk [vmem:[#allocation0] sm:$0x1] %vm57_vm9, %v56_v24  }
  0x86   :  { %64 = vst.msk [vmem:[#allocation0] sm:$0x1] %vm63_vm10, %v62_v25  }
  0x88   :  { %v68_v26 = vpop.permute.xlu0 %67   ;;  %v74_v27 = vpop.permute.xlu1 %73  }
  0x89   :  { %70 = vst.msk [vmem:[#allocation0] sm:$0x1] %vm69_vm11, %v68_v26  }
  0x8a   :  { %76 = vst.msk [vmem:[#allocation0] sm:$0x1] %vm75_vm12, %v74_v27  }
  0x8c   :  { %v80_v28 = vpop.permute.xlu0 %79   ;;  %v86_v29 = vpop.permute.xlu1 %85  }
  0x8d   :  { %82 = vst.msk [vmem:[#allocation0] sm:$0x1] %vm81_vm13, %v80_v28  }
  0x8e   :  { %88 = vst.msk [vmem:[#allocation0] sm:$0x1] %vm87_vm14, %v86_v29  }
  0x90   :  { %v92_v30 = vpop.permute.xlu0 %91  }
  0x91   :  { %94 = vst.msk [vmem:[#allocation0] sm:$0x1] %vm93_vm15, %v92_v30  }
  0x98   :  { %v99_v31 = vld [vmem:[#allocation0] sm:$0x1] }
  0x99   :  { %102 = vst [vmem:[%s210_s1] sm:$0x1] %v99_v31 }

// kernel: decoder_block_forward.1
= control target key start
LH: loop header
LB: loop body
LE: loop exit
PB: predicated region body
PF: predicated region fallthrough
CT: control target
= control target key end

     0   :  { %v3457_v0 = vmov 0.0   ;;  %vm3458_vm0 = vmmov 0   ;;  %vm90_vm1 = vcmask 523264   ;;  %vm505_vm2 = vcmask 1040384   ;;  %v525_v10 = vld [vmem:[#allocation2] sm:$0x1]  ;;  %s4335_s2 = inlined_call_operand.vmem [shape: bf16[2,64,128], index: 2, kind: input, shape index: {}]   ;;  %s4336_s0 = inlined_call_operand.vmem [shape: bf16[16,64], index: 0, kind: input, shape index: {}]   ;;  %s4337_s3 = inlined_call_operand.vmem [shape: bf16[3,128,128], index: 3, kind: input, shape index: {}]   ;;  %s4338_s4 = inlined_call_operand.vmem [shape: bf16[3,128,128], index: 4, kind: input, shape index: {}]   ;;  %s4339_s7 = inlined_call_operand.vmem [shape: f32[7,128], index: 7, kind: input, shape index: {}]   ;;  %s4340_s1 = inlined_call_operand.vmem [shape: bf16[2,18,128], index: 1, kind: input, shape index: {}]   ;;  %s4341_s6 = inlined_call_operand.vmem [shape: f32[128,128], index: 6, kind: input, shape index: {}]   ;;  %s4342_s5 = inlined_call_operand.vmem [shape: bf16[3,128,128], index: 5, kind: input, shape index: {}]   ;;  %s4343_s8 = inlined_call_operand.vmem [shape: f32[32,128], index: 8, kind: output, shape index: {}]  }
   0x1   :  { %3005 = vmatprep.subr.bf16.mxu1 %v3457_v0  ;;  %v3365_v1 = vld [vmem:[%s4335_s2 + $0x18] sm:$0xff]   ;;  %3013 = vmatprep.mubr.msk.bf16.mxu1 %vm3458_vm0, %v3457_v0  ;;  %v3366_v2 = vld [vmem:[%s4335_s2 + $0x10] sm:$0xff]   ;;  %v3367_v3 = vld [vmem:[%s4335_s2 + $0x8] sm:$0xff]   ;;  %vm523_vm3 = vsmask.f32 256  ;;  %v57_v44 = vlaneseq  ;;  %vm681_vm7 = vcmask 1043456  }
   0x2   :  { %3006 = vmatpush3.bf16.msra.mxu1 %v3365_v1  ;;  %v3368_v4 = vld [vmem:[%s4335_s2] sm:$0xff]   ;;  %v3370_v6 = vld [vmem:[%s4335_s2 + $0x38] sm:$0xff]   ;;  %v3371_v7 = vld [vmem:[%s4335_s2 + $0x30] sm:$0xff]   ;;  %vm531_vm4 = vsmask.f32 7938  ;;  %vm1007_vm14 = vcmask 1042432  }
   0x3   :  { %3007 = vmatprep.subr.bf16.mxu1 %v3457_v0  ;;  %v3369_v5 = vld [vmem:[%s4336_s0] sm:$0xff]   ;;  %v3372_v8 = vld [vmem:[%s4335_s2 + $0x28] sm:$0xff]   ;;  %vm3537_vm5 = vmand %vm505_vm2, %vm523_vm3  ;;  %v3621_v45 = vshrl.u32 %v57_v44, 7  ;;  %v3459_v48 = vmov 1966171168   ;;  %vm1008_vm15 = vcmask 1046532  }
   0x4   :  { %v3373_v9 = vld [vmem:[%s4335_s2 + $0x20] sm:$0xff]   ;;  %v533_v12 = vld [vmem:[#allocation2 + $0x8] sm:$0x1]  ;;  %v536_v13 = vld [vmem:[#allocation2 + $0x14] sm:$0x1]  ;;  %v526_v14 = vsel %vm3537_vm5, 0, %v525_v10  ;;  %v213_v49 = vunpack.c.l.s4 %v3459_v48 }
   0x5   :  { %vm3545_vm6 = vmand %vm505_vm2, %vm531_vm4  ;;  %527 = vst [vmem:[#allocation2] sm:$0x1] %v526_v14  ;;  %v3374_v18 = vld [vmem:[%s4337_s3 + $0x38] sm:$0xff]   ;;  %v3375_v19 = vld [vmem:[%s4337_s3 + $0x30] sm:$0xff]   ;;  %v3624_v46 = vsub.s32 0, %v3621_v45 }
   0x6   :  { %3008 = vmatpush3.bf16.msra.mxu1 %v3366_v2  ;;  %v534_v16 = vsel %vm3545_vm6, 0, %v533_v12  ;;  %v537_v17 = vsel %vm3545_vm6, 0, %v536_v13  ;;  %v3376_v20 = vld [vmem:[%s4337_s3 + $0x78] sm:$0xff]   ;;  %v3377_v21 = vld [vmem:[%s4337_s3 + $0x28] sm:$0xff]   ;;  %v1836_v23 = vld [vmem:[#allocation3 + $0xc] sm:$0x1]  ;;  %v214_v52 = vunpack.c.0.s8 %v213_v49 }
   0x7   :  { %3009 = vmatprep.subr.bf16.mxu1 %v3457_v0  ;;  %535 = vst [vmem:[#allocation2 + $0x8] sm:$0x1] %v534_v16  ;;  %538 = vst [vmem:[#allocation2 + $0x14] sm:$0x1] %v537_v17  ;;  %3029 = vmatprep.subr.bf16.mxu0 %v3376_v20  ;;  %v528_v22 = vld [vmem:[#allocation2 + $0xc] sm:$0x1] }
   0x8   :  { %3030 = vmatpush3.bf16.msra.mxu0 %v3376_v20  ;;  %v1839_v24 = vld [vmem:[#allocation3 + $0x8] sm:$0x1]  ;;  %v1837_v25 = vsel %vm3537_vm5, 0, %v1836_v23  ;;  %v1842_v27 = vld [vmem:[#allocation3 + $0x14] sm:$0x1]  ;;  %v529_v28 = vsel %vm3537_vm5, 0, %v528_v22  ;;  %v3631_v55 = vsub.s32 %v214_v52, %v3621_v45  ;;  %vm3738_vm9 = vmand %vm681_vm7, %vm531_vm4 }
   0x9   :  { %v1840_v26 = vsel %vm3545_vm6, 0, %v1839_v24  ;;  %v3378_v29 = vld [vmem:[%s4337_s3 + $0x70] sm:$0xff]   ;;  %1838 = vst [vmem:[#allocation3 + $0xc] sm:$0x1] %v1837_v25  ;;  %v1843_v30 = vsel %vm3545_vm6, 0, %v1842_v27  ;;  %v3379_v31 = vld [vmem:[%s4337_s3 + $0x20] sm:$0xff]  }
   0xa   :  { %3010 = vmatpush3.bf16.msra.mxu1 %v3367_v3  ;;  %1841 = vst [vmem:[#allocation3 + $0x8] sm:$0x1] %v1840_v26  ;;  %530 = vst [vmem:[#allocation2 + $0xc] sm:$0x1] %v529_v28  ;;  %3031 = vmatprep.subr.bf16.mxu0 %v3378_v29  ;;  %v3380_v32 = vld [vmem:[%s4337_s3 + $0x68] sm:$0xff]   ;;  %v3381_v33 = vld [vmem:[%s4337_s3 + $0x18] sm:$0xff]  }
   0xb   :  { %3011 = vmatprep.subr.bf16.mxu1 %v3457_v0  ;;  %1844 = vst [vmem:[#allocation3 + $0x14] sm:$0x1] %v1843_v30  ;;  %v3382_v34 = vld [vmem:[%s4337_s3 + $0x60] sm:$0xff]   ;;  %v3383_v35 = vld [vmem:[%s4337_s3 + $0x10] sm:$0xff]   ;;  %v3384_v36 = vld [vmem:[%s4337_s3 + $0x58] sm:$0xff]  }
   0xc   :  { %3032 = vmatpush3.bf16.msra.mxu0 %v3378_v29  ;;  %v3385_v37 = vld [vmem:[%s4337_s3 + $0x8] sm:$0xff]   ;;  %v3386_v38 = vld [vmem:[%s4337_s3 + $0x50] sm:$0xff]   ;;  %v3387_v39 = vld [vmem:[%s4337_s3] sm:$0xff]   ;;  %v3460_v61 = vmov 1983009808  }
   0xd   :  { %3033 = vmatprep.subr.bf16.mxu0 %v3380_v32  ;;  %v3389_v40 = vld [vmem:[%s4337_s3 + $0x48] sm:$0xff]   ;;  %v3609_v41 = vld [vmem:[%s4338_s4 + $0x78] sm:$0xff]   ;;  %v3391_v42 = vld [vmem:[%s4337_s3 + $0x40] sm:$0xff]   ;;  %v558_v62 = vunpack.c.l.s4 %v3460_v61  ;;  %vm639_vm8 = vsmask.f32 4368 }
   0xe   :  { %3012 = vmatpush3.bf16.msra.mxu1 %v3368_v4  ;;  %v3618_v43 = vld [vmem:[%s4337_s3 + $0xb8] sm:$0xff]   ;;  %v30_v47 = vld [vmem:[%s4339_s7] sm:$0x7f]  ;;  %vm3748_vm10 = vmor %vm523_vm3, %vm639_vm8  ;;  %vm719_vm11 = vsmask.f32 3328 }
   0xf   :  { %3017 = vmatprep.subr.bf16.mxu1 %v3457_v0  ;;  %v60_v50 = vrot.slane %v30_v47, %v3624_v46  ;;  %v559_v3 = vunpack.c.0.s8 %v558_v62  ;;  %v3648_v13 = vld [vmem:[%s4340_s1 + $0x4] sm:$0xf]  ;;  %vm720_vm12 = vsmask.f32 7440 }
  0x10   :  { %3034 = vmatpush3.bf16.msra.mxu0 %v3380_v32  ;;  %v1182_v25 = vshll.u32 %v3648_v13, 16  ;;  %v1186_v26 = vshrl.u32 %v3648_v13, 16  ;;  %vm3785_vm13 = vmor %vm719_vm11, %vm720_vm12 }
  0x11   :  { %3014 = vmatmul.mubr.msk.bf16.vlgmr.msra.gmra.mxu1 %vm90_vm1, %v3369_v5  ;;  %3035 = vmatprep.subr.bf16.mxu0 %v3382_v34  ;;  %v3651_v15 = vsub.s32 %v559_v3, %v3621_v45 }
  0x12   :  { %3018 = vmatpush3.bf16.msra.mxu1 %v3370_v6  ;;  %3025 = vmatprep.mubr.msk.bf16.mxu1 %vm3458_vm0, %v3457_v0  ;;  %v3640_v6 = vld [vmem:[%s4340_s1] sm:$0xf]  ;;  %vm3813_vm0 = vmor %vm1007_vm14, %vm1008_vm15 }
  0x13   :  { %3019 = vmatprep.subr.bf16.mxu1 %v3457_v0  ;;  %v1173_v16 = vshrl.u32 %v3640_v6, 16  ;;  %v1176_v17 = vshll.u32 %v3640_v6, 16 }
  0x14   :  { %3036 = vmatpush3.bf16.msra.mxu0 %v3382_v34 }
  0x15   :  { %3037 = vmatprep.subr.bf16.mxu0 %v3384_v36 }
  0x16   :  { %3020 = vmatpush3.bf16.msra.mxu1 %v3371_v7 }
  0x17   :  { %3021 = vmatprep.subr.bf16.mxu1 %v3457_v0 }
  0x18   :  { %3038 = vmatpush3.bf16.msra.mxu0 %v3384_v36 }
  0x19   :  { %3039 = vmatprep.subr.bf16.mxu0 %v3386_v38 }
  0x1a   :  { %3022 = vmatpush3.bf16.msra.mxu1 %v3372_v8 }
  0x1b   :  { %3023 = vmatprep.subr.bf16.mxu1 %v3457_v0 }
  0x1c   :  { %3040 = vmatpush3.bf16.msra.mxu0 %v3386_v38 }
  0x1d   :  { %3041 = vmatprep.subr.bf16.mxu0 %v3389_v40 }
  0x1e   :  { %3024 = vmatpush3.bf16.msra.mxu1 %v3373_v9 }
  0x1f   :  { %3049 = vmatprep.subr.bf16.mxu1 %v3374_v18 }
  0x20   :  { %3042 = vmatpush3.bf16.msra.mxu0 %v3389_v40 }
  0x21   :  { %3026 = vmatmul.mubr.msk.bf16.vlgmr.msra.gmra.mxu1 %vm90_vm1, %v3369_v5  ;;  %3043 = vmatprep.subr.bf16.mxu0 %v3391_v42 }
  0x22   :  { %3050 = vmatpush3.bf16.msra.mxu1 %v3374_v18 }
  0x23   :  { %3051 = vmatprep.subr.bf16.mxu1 %v3375_v19 }
  0x24   :  { %3044 = vmatpush3.bf16.msra.mxu0 %v3391_v42 }
  0x25   :  { %3069 = vmatprep.subr.bf16.mxu0 %v3618_v43 }
  0x26   :  { %3052 = vmatpush3.bf16.msra.mxu1 %v3375_v19 }
  0x27   :  { %3053 = vmatprep.subr.bf16.mxu1 %v3377_v21 }
  0x2a   :  { %3054 = vmatpush3.bf16.msra.mxu1 %v3377_v21 }
  0x2b   :  { %3055 = vmatprep.subr.bf16.mxu1 %v3379_v31 }
  0x2e   :  { %3056 = vmatpush3.bf16.msra.mxu1 %v3379_v31 }
  0x2f   :  { %3057 = vmatprep.subr.bf16.mxu1 %v3381_v33 }
  0x32   :  { %3058 = vmatpush3.bf16.msra.mxu1 %v3381_v33 }
  0x33   :  { %3059 = vmatprep.subr.bf16.mxu1 %v3383_v35 }
  0x36   :  { %3060 = vmatpush3.bf16.msra.mxu1 %v3383_v35 }
  0x37   :  { %3061 = vmatprep.subr.bf16.mxu1 %v3385_v37 }
  0x3a   :  { %3062 = vmatpush3.bf16.msra.mxu1 %v3385_v37 }
  0x3b   :  { %3063 = vmatprep.subr.bf16.mxu1 %v3387_v39 }
  0x3e   :  { %3064 = vmatpush3.bf16.msra.mxu1 %v3387_v39 }
  0x3f   :  { %3089 = vmatprep.subr.bf16.mxu1 %v3609_v41 }
  0xd1   :  { %v128_v51 = vpop.f32.mrf.mxu1 }
  0xd2   :  { %v129_v53 = vadd.f32 %v128_v51, %v60_v50 }
  0xd3   :  { %v3015_v54 = vpop.f32.mrf.mxu1 }
  0xd4   :  { %v211_v57 = vcombine.high %v129_v53, %v129_v53  ;;  %v218_v60 = vrot.slane %v129_v53, %v3631_v55 }
  0xd5   :  { %v131_v56 = vpop.f32.mrf.mxu1 }
  0xd6   :  { %v132_v58 = vadd.f32 %v131_v56, %v60_v50  ;;  %v225_v63 = vrot.slane %v211_v57, %v3631_v55  ;;  %v226_v1 = vcombine.high %v218_v60, %v218_v60  ;;  %v234_v7 = vrot.slane %v218_v60, %v3631_v55 }
  0xd7   :  { %v3016_v59 = vpop.f32.mrf.mxu1 }
  0xd8   :  { %v260_v0 = vcombine.high %v132_v58, %v132_v58  ;;  %v267_v2 = vrot.slane %v132_v58, %v3631_v55  ;;  %v227_v4 = vcombine.high %v225_v63, %v225_v63  ;;  %v241_v8 = vrot.slane %v225_v63, %v3631_v55 }
  0xd9   :  { %v248_v9 = vrot.slane %v226_v1, %v3631_v55  ;;  %v256_v27 = vcombine.high %v234_v7, %v234_v7 }
  0xda   :  { %v274_v5 = vrot.slane %v260_v0, %v3631_v55  ;;  %v275_v10 = vcombine.high %v267_v2, %v267_v2  ;;  %v255_v18 = vrot.slane %v227_v4, %v3631_v55  ;;  %v3657_v20 = vrot.slane %v267_v2, %v3631_v55 }
  0xdb   :  { %v257_v28 = vcombine.high %v241_v8, %v241_v8  ;;  %v258_v29 = vcombine.high %v248_v9, %v248_v9 }
  0xdc   :  { %v276_v19 = vcombine.high %v274_v5, %v274_v5  ;;  %v3660_v21 = vrot.slane %v274_v5, %v3631_v55  ;;  %v3666_v30 = vrot.slane %v275_v10, %v3631_v55  ;;  %v259_v36 = vcombine.high %v255_v18, %v255_v18 }
  0xdd   :  { %v305_v38 = vcombine.high %v3657_v20, %v3657_v20 }
  0xde   :  { %v3671_v37 = vrot.slane %v276_v19, %v3631_v55  ;;  %v306_v39 = vcombine.high %v3660_v21, %v3660_v21  ;;  %v307_v49 = vcombine.high %v3666_v30, %v3666_v30 }
  0xe1   :  { %v202_v12 = vpop.f32.mrf.mxu1 }
  0xe2   :  { %v203_v14 = vadd.f32 %v202_v12, %v60_v50 }
  0xe3   :  { %v3027_v22 = vpop.f32.mrf.mxu1 }
  0xe4   :  { %v327_v23 = vcombine.high %v203_v14, %v203_v14  ;;  %v334_v24 = vrot.slane %v203_v14, %v3631_v55 }
  0xe5   :  { %v205_v31 = vpop.f32.mrf.mxu1 }
  0xe6   :  { %v341_v32 = vrot.slane %v327_v23, %v3631_v55  ;;  %v342_v33 = vcombine.high %v334_v24, %v334_v24  ;;  %v350_v34 = vrot.slane %v334_v24, %v3631_v55  ;;  %v206_v35 = vadd.f32 %v205_v31, %v60_v50 }
  0xe7   :  { %v3028_v40 = vpop.f32.mrf.mxu1 }
  0xe8   :  { %v343_v42 = vcombine.high %v341_v32, %v341_v32  ;;  %v357_v44 = vrot.slane %v341_v32, %v3631_v55  ;;  %v364_v47 = vrot.slane %v342_v33, %v3631_v55  ;;  %v372_v48 = vcombine.high %v350_v34, %v350_v34 }
  0xe9   :  { %v428_v50 = vrot.slane %v350_v34, %v3624_v46  ;;  %v376_v51 = vcombine.high %v206_v35, %v206_v35  ;;  %v383_v52 = vrot.slane %v206_v35, %v3631_v55 }
  0xea   :  { %v371_v53 = vrot.slane %v343_v42, %v3631_v55  ;;  %v373_v54 = vcombine.high %v357_v44, %v357_v44  ;;  %v374_v56 = vcombine.high %v364_v47, %v364_v47  ;;  %v432_v57 = vrot.slane %v364_v47, %v3624_v46 }
  0xeb   :  { %v436_v58 = vrot.slane %v372_v48, %v3624_v46  ;;  %v444_v59 = vrot.slane %v357_v44, %v3624_v46  ;;  %v506_v60 = vsel %vm505_vm2, %v234_v7, %v428_v50  ;;  %v390_v61 = vrot.slane %v376_v51, %v3631_v55 }
  0xec   :  { %v375_v62 = vcombine.high %v371_v53, %v371_v53  ;;  %v440_v63 = vrot.slane %v374_v56, %v3624_v46  ;;  %v448_v0 = vrot.slane %v371_v53, %v3624_v46  ;;  %v452_v1 = vrot.slane %v373_v54, %v3624_v46 }
  0xed   :  { %v507_v2 = vsel %vm505_vm2, %v248_v9, %v432_v57  ;;  %v508_v3 = vsel %vm505_vm2, %v256_v27, %v436_v58  ;;  %v510_v4 = vsel %vm505_vm2, %v241_v8, %v444_v59  ;;  %v391_v5 = vcombine.high %v383_v52, %v383_v52 }
  0xee   :  { %v456_v10 = vrot.slane %v375_v62, %v3624_v46  ;;  %v509_v7 = vsel %vm505_vm2, %v258_v29, %v440_v63  ;;  %v511_v12 = vsel %vm505_vm2, %v255_v18, %v448_v0  ;;  %v512_v14 = vsel %vm505_vm2, %v257_v28, %v452_v1 }
  0xef   :  { %v555_v19 = vcombine.low %v506_v60, %v507_v2  ;;  %v556_v22 = vcombine.low %v508_v3, %v509_v7  ;;  %v572_v23 = vcombine.low %v510_v4, %v511_v12  ;;  %v392_v24 = vcombine.high %v390_v61, %v390_v61 }
  0xf0   :  { %v513_v9 = vsel %vm505_vm2, %v259_v36, %v456_v10  ;;  %v399_v27 = vrot.slane %v383_v52, %v3631_v55  ;;  %v406_v8 = vrot.slane %v390_v61, %v3631_v55  ;;  %v413_v31 = vrot.slane %v391_v5, %v3631_v55 }
  0xf1   :  { %v563_v32 = vrot.slane %v555_v19, %v3651_v15  ;;  %v570_v29 = vrot.slane %v556_v22, %v3651_v15  ;;  %v573_v18 = vcombine.low %v512_v14, %v513_v9  ;;  %v580_v28 = vrot.slane %v572_v23, %v3651_v15  ;;  %v687_v23 = vld [vmem:[#allocation2 + $0x8] sm:$0x1] }
  0xf2   :  { %v420_v33 = vrot.slane %v392_v24, %v3631_v55  ;;  %v421_v34 = vcombine.high %v399_v27, %v399_v27  ;;  %v422_v35 = vcombine.high %v406_v8, %v406_v8  ;;  %v423_v40 = vcombine.high %v413_v31, %v413_v31 }
  0xf3   :  { %v571_v36 = vcombine.low %v563_v32, %v570_v29  ;;  %v587_v42 = vrot.slane %v573_v18, %v3651_v15  ;;  %v460_v44 = vrot.slane %v399_v27, %v3624_v46  ;;  %v464_v47 = vrot.slane %v413_v31, %v3624_v46 }
  0xf4   :  { %v424_v48 = vcombine.high %v420_v33, %v420_v33  ;;  %v468_v50 = vrot.slane %v421_v34, %v3624_v46  ;;  %v472_v51 = vrot.slane %v423_v40, %v3624_v46  ;;  %v476_v52 = vrot.slane %v406_v8, %v3624_v46 }
  0xf5   :  { %v588_v53 = vcombine.low %v580_v28, %v587_v42  ;;  %v2817_v54 = vpack.c.bf16 %v571_v36, %v571_v36  ;;  %v480_v55 = vrot.slane %v420_v33, %v3624_v46  ;;  %v484_v56 = vrot.slane %v422_v35, %v3624_v46  ;;  %v3769_v36 = vld [vmem:[%s4340_s1 + $0x8] sm:$0x1] }
  0xf6   :  { %v308_v57 = vcombine.high %v3671_v37, %v3671_v37  ;;  %v488_v58 = vrot.slane %v424_v48, %v3624_v46  ;;  %v514_v59 = vsel %vm505_vm2, %v3657_v20, %v460_v44  ;;  %v515_v60 = vsel %vm505_vm2, %v3666_v30, %v464_v47  ;;  %v690_v48 = vld [vmem:[#allocation2 + $0xc] sm:$0xf] }
  0xf7   :  { %v2818_v61 = vpack.c.bf16 %v588_v53, %v588_v53  ;;  %v642_v62 = vshrl.u32 %v2817_v54, 16  ;;  %v516_v63 = vsel %vm505_vm2, %v305_v38, %v468_v50  ;;  %v517_v0 = vsel %vm505_vm2, %v307_v49, %v472_v51  ;;  %v683_v49 = vld [vmem:[#allocation2] sm:$0xf] }
  0xf8   :  { %v645_v1 = vshll.u32 %v2817_v54, 16  ;;  %v518_v2 = vsel %vm505_vm2, %v3660_v21, %v476_v52  ;;  %v519_v46 = vsel %vm505_vm2, %v3671_v37, %v480_v55  ;;  %v521_v3 = vsel %vm505_vm2, %v308_v57, %v488_v58  ;;  %v694_v54 = vld [vmem:[#allocation2 + $0x14] sm:$0x1] }
  0xf9   :  { %v644_v4 = vrot.slane %v642_v62, 7  ;;  %v650_v30 = vshrl.u32 %v2818_v61, 16  ;;  %v520_v20 = vsel %vm505_vm2, %v306_v39, %v484_v56  ;;  %v589_v5 = vcombine.low %v514_v59, %v515_v60 }
  0xfa   :  { %v590_v10 = vcombine.low %v516_v63, %v517_v0  ;;  %v606_v7 = vcombine.low %v518_v2, %v519_v46  ;;  %v607_v37 = vcombine.low %v520_v20, %v521_v3  ;;  %v1175_v12 = vrot.slane %v1173_v16, 4 }
  0xfb   :  { %v647_v14 = vor.u32 %v645_v1, %v644_v4  ;;  %v652_v19 = vrot.slane %v650_v30, 7  ;;  %v653_v22 = vshll.u32 %v2818_v61, 16  ;;  %v1178_v21 = vrot.slane %v1176_v17, 5 }
  0xfc   :  { %v597_v24 = vrot.slane %v589_v5, %v3651_v15  ;;  %v604_v9 = vrot.slane %v590_v10, %v3651_v15  ;;  %v614_v27 = vrot.slane %v606_v7, %v3651_v15  ;;  %v621_v16 = vrot.slane %v607_v37, %v3651_v15 }
  0xfd   :  { %v648_v8 = vrot.slane %v644_v4, 4  ;;  %v655_v31 = vor.u32 %v653_v22, %v652_v19  ;;  %v657_v32 = vrot.slane %v652_v19, 4  ;;  %v684_v17 = vsel %vm3738_vm9, %v647_v14, %v683_v49  ;;  %v3446_v19 = vld [vmem:[%s4342_s5 + $0xa8] sm:$0xff]  }
  0xfe   :  { %685 = vst [vmem:[#allocation2] sm:$0xf] %v684_v17  ;;  %v605_v29 = vcombine.low %v597_v24, %v604_v9  ;;  %v622_v18 = vcombine.low %v614_v27, %v621_v16  ;;  %v1184_v34 = vrot.slane %v1182_v25, 5  ;;  %v1188_v15 = vrot.slane %v1186_v26, 4 }
  0xff   :  { %v656_v28 = vsel %vm3748_vm10, %v648_v8, %v655_v31  ;;  %v688_v33 = vsel %vm3537_vm5, %v657_v32, %v687_v23  ;;  %v1179_v42 = vor.u32 %v1178_v21, %v1175_v12  ;;  %v1192_v25 = vshll.u32 %v3769_v36, 16 }
 0x100   :  { %686 = vst [vmem:[#allocation2 + $0x4] sm:$0xf] %v656_v28  ;;  %689 = vst [vmem:[#allocation2 + $0x8] sm:$0x1] %v688_v33  ;;  %v2819_v35 = vpack.c.bf16 %v605_v29, %v605_v29  ;;  %v2820_v40 = vpack.c.bf16 %v622_v18, %v622_v18  ;;  %v1189_v50 = vor.u32 %v1188_v15, %v1184_v34 }
 0x101   :  { %v1180_v56 = vrot.slane %v1179_v42, 4  ;;  %v1194_v1 = vrot.slane %v1192_v25, 5 }
 0x102   :  { %v659_v44 = vshrl.u32 %v2819_v35, 16  ;;  %v667_v47 = vshrl.u32 %v2820_v40, 16  ;;  %v662_v52 = vshll.u32 %v2819_v35, 16  ;;  %v670_v53 = vshll.u32 %v2820_v40, 16 }
 0x103   :  { %v1190_v0 = vrot.slane %v1189_v50, 4  ;;  %v1185_v23 = vsel %vm3785_vm13, %v1180_v56, %v1184_v34  ;;  %v3394_v34 = vld [vmem:[%s4338_s4 + $0x70] sm:$0xff]  }
 0x104   :  { %v661_v51 = vrot.slane %v659_v44, 7  ;;  %v669_v26 = vrot.slane %v667_v47, 7 }
 0x105   :  { %v697_v55 = vld [vmem:[#allocation2] sm:$0xf]  ;;  %v1195_v24 = vsel %vm3785_vm13, %v1190_v0, %v1194_v1 }
 0x106   :  { %v664_v57 = vor.u32 %v662_v52, %v661_v51  ;;  %v665_v58 = vrot.slane %v661_v51, 4  ;;  %v672_v59 = vor.u32 %v670_v53, %v669_v26  ;;  %v674_v60 = vrot.slane %v669_v26, 4  ;;  %v3396_v26 = vld [vmem:[%s4338_s4 + $0x68] sm:$0xff]  }
 0x107   :  { %v3772_v61 = vld [vmem:[#allocation2 + $0x4] sm:$0xf]  ;;  %v723_v62 = vshrl.u32 %v697_v55, 16  ;;  %v726_v63 = vshll.u32 %v697_v55, 16  ;;  %v717_v30 = vld [vmem:[#allocation2 + $0x8] sm:$0x1]  ;;  %v2701_v17 = vcombine.low %v1185_v23, %v1195_v24 }
 0x108   :  { %v673_v2 = vsel %vm3748_vm10, %v665_v58, %v672_v59  ;;  %v691_v46 = vsel %vm3738_vm9, %v664_v57, %v690_v48  ;;  %v695_v3 = vsel %vm3537_vm5, %v674_v60, %v694_v54  ;;  %v2647_v4 = vcombine.low %v697_v55, %v3772_v61  ;;  %v1001_v54 = vld [vmem:[#allocation2] sm:$0xe]  ;;  %v3820_v59 = vld [vmem:[%s4340_s1 + $0xc] sm:$0xf] }
 0x109   :  { %692 = vst [vmem:[#allocation2 + $0xc] sm:$0xf] %v691_v46  ;;  %693 = vst [vmem:[#allocation2 + $0x10] sm:$0xf] %v673_v2  ;;  %v725_v20 = vrot.slane %v723_v62, 4  ;;  %v728_v5 = vrot.slane %v726_v63, 5 }
 0x10a   :  { %696 = vst [vmem:[#allocation2 + $0x14] sm:$0x1] %v695_v3  ;;  %v732_v49 = vshll.u32 %v3772_v61, 16  ;;  %v736_v10 = vshrl.u32 %v3772_v61, 16  ;;  %3065 = vmatprep.mubr.bf16.mxu1 %v2647_v4  ;;  %v742_v14 = vshll.u32 %v717_v30, 16  ;;  %v1012_v32 = vrot.slane %v3772_v61, 5 }
 0x10b   :  { %v729_v7 = vor.u32 %v728_v5, %v725_v20  ;;  %v1015_v55 = vrot.slane %v717_v30, 5  ;;  %v2657_v60 = vrot.slane %v1001_v54, 9  ;;  %v3398_v62 = vld [vmem:[%s4338_s4 + $0x60] sm:$0xff]   ;;  %v3830_v63 = vld [vmem:[%s4340_s1 + $0x10] sm:$0xf]  ;;  %v1197_v4 = vshrl.u32 %v3820_v59, 16 }
 0x10c   :  { %v734_v37 = vrot.slane %v732_v49, 5  ;;  %v738_v12 = vrot.slane %v736_v10, 4  ;;  %v744_v27 = vrot.slane %v742_v14, 5  ;;  %v1014_v52 = vrot.slane %v1012_v32, 4  ;;  %v3395_v3 = vld [vmem:[%s4337_s3 + $0xb0] sm:$0xff]   ;;  %v3400_v10 = vld [vmem:[%s4338_s4 + $0x58] sm:$0xff]  }
 0x10d   :  { %v730_v22 = vrot.slane %v729_v7, 4  ;;  %v1013_v46 = vsel %vm3813_vm0, %v2657_v60, %v1012_v32  ;;  %v1200_v20 = vshll.u32 %v3820_v59, 16  ;;  %v1206_v5 = vshll.u32 %v3830_v63, 16  ;;  %v3397_v7 = vld [vmem:[%s4337_s3 + $0xa8] sm:$0xff]   ;;  %v3399_v23 = vld [vmem:[%s4337_s3 + $0xa0] sm:$0xff]  }
 0x10e   :  { %v739_v21 = vor.u32 %v738_v12, %v734_v37  ;;  %v1016_v61 = vsel %vm3813_vm0, %v1014_v52, %v1015_v55  ;;  %v1210_v49 = vshrl.u32 %v3830_v63, 16  ;;  %v1451_v32 = vld [vmem:[%s4340_s1] sm:$0xe] }
 0x10f   :  { %v735_v31 = vsel %vm3785_vm13, %v730_v22, %v734_v37  ;;  %v2675_v30 = vcombine.low %v1013_v46, %v1016_v61  ;;  %v1199_v37 = vrot.slane %v1197_v4, 4  ;;  %v1202_v12 = vrot.slane %v1200_v20, 5  ;;  %v3407_v54 = vld [vmem:[%s4337_s3 + $0x80] sm:$0xff]   ;;  %v3416_v46 = vld [vmem:[%s4338_s4 + $0x98] sm:$0xff]   ;;  %v1452_v20 = vld [vmem:[%s4340_s1 + $0xc] sm:$0xe] }
 0x110   :  { %v740_v9 = vrot.slane %v739_v21, 4  ;;  %v699_v16 = vld [vmem:[#allocation2 + $0xc] sm:$0xf]  ;;  %v3793_v8 = vld [vmem:[#allocation2 + $0x10] sm:$0xf]  ;;  %v1208_v14 = vrot.slane %v1206_v5, 5 }
 0x111   :  { %v747_v29 = vshrl.u32 %v699_v16, 16  ;;  %v750_v18 = vshll.u32 %v699_v16, 16  ;;  %v2648_v28 = vcombine.low %v699_v16, %v3793_v8  ;;  %v3804_v15 = vld [vmem:[#allocation2 + $0x14] sm:$0x1]  ;;  %v756_v40 = vshll.u32 %v3793_v8, 16  ;;  %v3404_v16 = vld [vmem:[%s4338_s4 + $0x48] sm:$0xff]  }
 0x112   :  { %v745_v33 = vsel %vm3785_vm13, %v740_v9, %v744_v27  ;;  %v760_v42 = vshrl.u32 %v3793_v8, 16  ;;  %v766_v25 = vshll.u32 %v3804_v15, 16  ;;  %v1212_v22 = vrot.slane %v1210_v49, 4  ;;  %v3402_v21 = vld [vmem:[%s4338_s4 + $0x50] sm:$0xff]   ;;  %v3417_v5 = vld [vmem:[%s4338_s4 + $0x18] sm:$0xff]  }
 0x113   :  { %v2637_v35 = vcombine.low %v735_v31, %v745_v33  ;;  %3066 = vmatmul.mubr.bf16.vlgmr.msra.gmra.mxu1 %v2648_v28  ;;  %v749_v44 = vrot.slane %v747_v29, 4  ;;  %v752_v47 = vrot.slane %v750_v18, 5  ;;  %v758_v48 = vrot.slane %v756_v40, 5  ;;  %v3406_v33 = vld [vmem:[%s4338_s4 + $0x40] sm:$0xff]  }
 0x114   :  { %3090 = vmatpush3.bf16.msra.mxu1 %v3609_v41  ;;  %v762_v50 = vrot.slane %v760_v42, 4  ;;  %3105 = vmatprep.mubr.bf16.mxu1 %v2701_v17  ;;  %v768_v41 = vrot.slane %v766_v25, 5  ;;  %v1203_v24 = vor.u32 %v1202_v12, %v1199_v37  ;;  %v1213_v9 = vor.u32 %v1212_v22, %v1208_v14  ;;  %v3401_v17 = vld [vmem:[%s4337_s3 + $0x98] sm:$0xff]   ;;  %v3403_v42 = vld [vmem:[%s4337_s3 + $0x90] sm:$0xff]   ;;  %v3405_v25 = vld [vmem:[%s4337_s3 + $0x88] sm:$0xff]  }
 0x115   :  { %3045 = vmatprep.mubr.bf16.mxu0 %v2637_v35  ;;  %3091 = vmatprep.subr.bf16.mxu1 %v3394_v34  ;;  %v753_v51 = vor.u32 %v752_v47, %v749_v44  ;;  %v1459_v31 = vrot.slane %v3648_v13, 5  ;;  %v1462_v40 = vrot.slane %v3769_v36, 5  ;;  %v1019_v52 = vrot.slane %v3793_v8, 5  ;;  %v3412_v8 = vld [vmem:[%s4338_s4 + $0xa8] sm:$0xff]   ;;  %v3422_v37 = vld [vmem:[%s4338_s4 + $0x80] sm:$0xff]   ;;  %v3419_v12 = vld [vmem:[%s4338_s4 + $0x10] sm:$0xff]  }
 0x116   :  { %v763_v53 = vor.u32 %v762_v50, %v758_v48  ;;  %v1204_v29 = vrot.slane %v1203_v24, 4  ;;  %v1214_v18 = vrot.slane %v1213_v9, 4  ;;  %v1466_v4 = vrot.slane %v3830_v63, 5  ;;  %v3965_v9 = vld [vmem:[%s4341_s6 + $0x78] sm:$0xff] }
 0x117   :  { %v754_v56 = vrot.slane %v753_v51, 4  ;;  %v1461_v35 = vrot.slane %v1459_v31, 4  ;;  %v1021_v55 = vrot.slane %v1019_v52, 4  ;;  %v2722_v49 = vrot.slane %v1452_v20, 9 }
 0x118   :  { %v764_v57 = vrot.slane %v763_v53, 4  ;;  %3092 = vmatpush3.bf16.msra.mxu1 %v3394_v34  ;;  %v2721_v34 = vrot.slane %v1451_v32, 9  ;;  %v1209_v44 = vsel %vm3785_vm13, %v1204_v29, %v1208_v14  ;;  %v3410_v53 = vld [vmem:[%s4338_s4 + $0xb0] sm:$0xff]   ;;  %v2712_v24 = vcombine.low %v3820_v59, %v3830_v63  ;;  %v3978_v59 = vld [vmem:[%s4341_s6 + $0x68] sm:$0xff]  ;;  %v3987_v63 = vld [vmem:[%s4341_s6 + $0x60] sm:$0xff] }
 0x119   :  { %3093 = vmatprep.subr.bf16.mxu1 %v3396_v26  ;;  %v759_v0 = vsel %vm3785_vm13, %v754_v56, %v758_v48  ;;  %v3408_v48 = vld [vmem:[%s4338_s4 + $0xb8] sm:$0xff]   ;;  %v1463_v50 = vsel %vm3813_vm0, %v1461_v35, %v1462_v40  ;;  %v1002_v56 = vld [vmem:[#allocation2 + $0xc] sm:$0xe]  ;;  %v1467_v14 = vsel %vm3813_vm0, %v2722_v49, %v1466_v4  ;;  %v4081_v35 = vld [vmem:[%s4341_s6 + $0x10] sm:$0xff] }
 0x11a   :  { %v769_v1 = vsel %vm3785_vm13, %v764_v57, %v768_v41  ;;  %v1460_v36 = vsel %vm3813_vm0, %v2721_v34, %v1459_v31  ;;  %v1022_v57 = vrot.slane %v3804_v15, 5  ;;  %v3409_v41 = vld [vmem:[%s4338_s4 + $0x38] sm:$0xff]   ;;  %v2658_v60 = vrot.slane %v1002_v56, 9  ;;  %v4005_v31 = vld [vmem:[%s4341_s6 + $0x50] sm:$0xff]  ;;  %v4014_v32 = vld [vmem:[%s4341_s6 + $0x48] sm:$0xff] }
 0x11b   :  { %v2638_v2 = vcombine.low %v759_v0, %v769_v1  ;;  %v2711_v0 = vcombine.low %v3640_v6, %v3648_v13  ;;  %v3413_v6 = vld [vmem:[%s4338_s4 + $0x28] sm:$0xff]   ;;  %v3418_v13 = vld [vmem:[%s4338_s4 + $0x90] sm:$0xff]   ;;  %v4036_v29 = vld [vmem:[%s4341_s6 + $0x38] sm:$0xff] }
 0x11c   :  { %3094 = vmatpush3.bf16.msra.mxu1 %v3396_v26  ;;  %v2739_v26 = vcombine.low %v1460_v36, %v1463_v50  ;;  %v1023_v61 = vsel %vm3813_vm0, %v1021_v55, %v1022_v57  ;;  %v1020_v15 = vsel %vm3813_vm0, %v2658_v60, %v1019_v52  ;;  %v4072_v34 = vld [vmem:[%s4341_s6 + $0x18] sm:$0xff]  ;;  %v4090_v40 = vld [vmem:[%s4341_s6 + $0x8] sm:$0xff] }
 0x11d   :  { %3046 = vmatmul.mubr.bf16.vlgmr.msra.gmra.mxu0 %v2638_v2  ;;  %3095 = vmatprep.subr.bf16.mxu1 %v3398_v62  ;;  %v2676_v1 = vcombine.low %v1020_v15, %v1023_v61  ;;  %v3411_v2 = vld [vmem:[%s4338_s4 + $0x30] sm:$0xff]  }
 0x11e   :  { %3070 = vmatpush3.bf16.msra.mxu0 %v3618_v43  ;;  %3085 = vmatprep.mubr.bf16.mxu0 %v2675_v30  ;;  %v3858_v43 = vld [vmem:[%s4340_s1 + $0x14] sm:$0x1]  ;;  %v3420_v30 = vld [vmem:[%s4338_s4 + $0x88] sm:$0xff]  }
 0x11f   :  { %3071 = vmatprep.subr.bf16.mxu0 %v3395_v3  ;;  %v1216_v27 = vshll.u32 %v3858_v43, 16 }
 0x120   :  { %3096 = vmatpush3.bf16.msra.mxu1 %v3398_v62  ;;  %v3414_v62 = vld [vmem:[%s4338_s4 + $0xa0] sm:$0xff]  }
 0x121   :  { %3097 = vmatprep.subr.bf16.mxu1 %v3400_v10  ;;  %v1218_v28 = vrot.slane %v1216_v27, 5  ;;  %v3970_v27 = vld [vmem:[%s4341_s6 + $0x70] sm:$0xff] }
 0x122   :  { %3072 = vmatpush3.bf16.msra.mxu0 %v3395_v3  ;;  %v3415_v3 = vld [vmem:[%s4338_s4 + $0x20] sm:$0xff]  }
 0x123   :  { %3073 = vmatprep.subr.bf16.mxu0 %v3397_v7  ;;  %v1219_v47 = vsel %vm3785_vm13, %v1214_v18, %v1218_v28  ;;  %v4046_v18 = vld [vmem:[%s4341_s6 + $0x30] sm:$0xff]  ;;  %v4054_v28 = vld [vmem:[%s4341_s6 + $0x28] sm:$0xff] }
 0x124   :  { %3098 = vmatpush3.bf16.msra.mxu1 %v3400_v10  ;;  %v2702_v51 = vcombine.low %v1209_v44, %v1219_v47  ;;  %v1468_v10 = vrot.slane %v1466_v4, 4 }
 0x125   :  { %3099 = vmatprep.subr.bf16.mxu1 %v3402_v21 }
 0x126   :  { %3074 = vmatpush3.bf16.msra.mxu0 %v3397_v7  ;;  %v1469_v7 = vrot.slane %v3858_v43, 5 }
 0x127   :  { %3075 = vmatprep.subr.bf16.mxu0 %v3399_v23 }
 0x128   :  { %3100 = vmatpush3.bf16.msra.mxu1 %v3402_v21  ;;  %v1470_v22 = vsel %vm3813_vm0, %v1468_v10, %v1469_v7  ;;  %v3421_v21 = vld [vmem:[%s4338_s4 + $0x8] sm:$0xff]  }
 0x129   :  { %3101 = vmatprep.subr.bf16.mxu1 %v3404_v16  ;;  %v2740_v43 = vcombine.low %v1467_v14, %v1470_v22 }
 0x12a   :  { %3076 = vmatpush3.bf16.msra.mxu0 %v3399_v23  ;;  %v3423_v23 = vld [vmem:[%s4338_s4] sm:$0xff]  }
 0x12b   :  { %3077 = vmatprep.subr.bf16.mxu0 %v3401_v17 }
 0x12c   :  { %3102 = vmatpush3.bf16.msra.mxu1 %v3404_v16  ;;  %v3996_v16 = vld [vmem:[%s4341_s6 + $0x58] sm:$0xff] }
 0x12d   :  { %3103 = vmatprep.subr.bf16.mxu1 %v3406_v33 }
 0x12e   :  { %3078 = vmatpush3.bf16.msra.mxu0 %v3401_v17  ;;  %v4027_v17 = vld [vmem:[%s4341_s6 + $0x40] sm:$0xff] }
 0x12f   :  { %3079 = vmatprep.subr.bf16.mxu0 %v3403_v42 }
 0x130   :  { %3104 = vmatpush3.bf16.msra.mxu1 %v3406_v33  ;;  %v4063_v33 = vld [vmem:[%s4341_s6 + $0x20] sm:$0xff] }
 0x131   :  { %3129 = vmatprep.subr.bf16.mxu1 %v3408_v48 }
 0x132   :  { %3080 = vmatpush3.bf16.msra.mxu0 %v3403_v42  ;;  %v4097_v42 = vld [vmem:[%s4341_s6] sm:$0xff] }
 0x133   :  { %3081 = vmatprep.subr.bf16.mxu0 %v3405_v25  ;;  %3106 = vmatmul.mubr.bf16.vlgmr.msra.gmra.mxu1 %v2702_v51 }
 0x134   :  { %3130 = vmatpush3.bf16.msra.mxu1 %v3408_v48  ;;  %3145 = vmatprep.mubr.bf16.mxu1 %v2739_v26 }
 0x135   :  { %3131 = vmatprep.subr.bf16.mxu1 %v3410_v53 }
 0x136   :  { %3082 = vmatpush3.bf16.msra.mxu0 %v3405_v25 }
 0x137   :  { %3083 = vmatprep.subr.bf16.mxu0 %v3407_v54 }
 0x138   :  { %3132 = vmatpush3.bf16.msra.mxu1 %v3410_v53 }
 0x139   :  { %3133 = vmatprep.subr.bf16.mxu1 %v3412_v8 }
 0x13a   :  { %3084 = vmatpush3.bf16.msra.mxu0 %v3407_v54 }
 0x13b   :  { %3109 = vmatprep.subr.bf16.mxu0 %v3409_v41 }
 0x13c   :  { %3134 = vmatpush3.bf16.msra.mxu1 %v3412_v8 }
 0x13d   :  { %3086 = vmatmul.mubr.bf16.vlgmr.msra.gmra.mxu0 %v2676_v1  ;;  %3135 = vmatprep.subr.bf16.mxu1 %v3414_v62 }
 0x13e   :  { %3110 = vmatpush3.bf16.msra.mxu0 %v3409_v41  ;;  %3125 = vmatprep.mubr.bf16.mxu0 %v2711_v0 }
 0x13f   :  { %3111 = vmatprep.subr.bf16.mxu0 %v3411_v2 }
 0x140   :  { %3136 = vmatpush3.bf16.msra.mxu1 %v3414_v62 }
 0x141   :  { %3137 = vmatprep.subr.bf16.mxu1 %v3416_v46 }
 0x142   :  { %3112 = vmatpush3.bf16.msra.mxu0 %v3411_v2 }
 0x143   :  { %3113 = vmatprep.subr.bf16.mxu0 %v3413_v6 }
 0x144   :  { %3138 = vmatpush3.bf16.msra.mxu1 %v3416_v46  ;;  %v1603_v46 = vsub.s32 1, %v3621_v45 }
 0x145   :  { %3139 = vmatprep.subr.bf16.mxu1 %v3418_v13 }
 0x146   :  { %3114 = vmatpush3.bf16.msra.mxu0 %v3413_v6 }
 0x147   :  { %3115 = vmatprep.subr.bf16.mxu0 %v3415_v3 }
 0x148   :  { %3140 = vmatpush3.bf16.msra.mxu1 %v3418_v13 }
 0x149   :  { %3141 = vmatprep.subr.bf16.mxu1 %v3420_v30 }
 0x14a   :  { %3116 = vmatpush3.bf16.msra.mxu0 %v3415_v3 }
 0x14b   :  { %3117 = vmatprep.subr.bf16.mxu0 %v3417_v5 }
 0x14c   :  { %3142 = vmatpush3.bf16.msra.mxu1 %v3420_v30 }
 0x14d   :  { %3143 = vmatprep.subr.bf16.mxu1 %v3422_v37 }
 0x14e   :  { %3118 = vmatpush3.bf16.msra.mxu0 %v3417_v5 }
 0x14f   :  { %3119 = vmatprep.subr.bf16.mxu0 %v3419_v12 }
 0x150   :  { %3144 = vmatpush3.bf16.msra.mxu1 %v3422_v37 }
 0x151   :  { %3187 = vmatprep.subr.mxu1 %v3965_v9 }
 0x152   :  { %3120 = vmatpush3.bf16.msra.mxu0 %v3419_v12  ;;  %v4110_v12 = vld [vmem:[%s4339_s7] sm:$0x7f] }
 0x153   :  { %3121 = vmatprep.subr.bf16.mxu0 %v3421_v21  ;;  %3146 = vmatmul.mubr.bf16.vlgmr.msra.gmra.mxu1 %v2740_v43  ;;  %v1604_v14 = vrot.slane %v4110_v12, %v1603_v46 }
 0x154   :  { %3188 = vmatpush3.msra.mxu1 %v3965_v9 }
 0x155   :  { %3189 = vmatprep.subr.mxu1 %v3970_v27 }
 0x156   :  { %3122 = vmatpush3.bf16.msra.mxu0 %v3421_v21  ;;  %3190 = vmatpush3.msra.mxu1 %v3970_v27 }
 0x157   :  { %3123 = vmatprep.subr.bf16.mxu0 %v3423_v23  ;;  %3191 = vmatprep.subr.mxu1 %v3978_v59 }
 0x158   :  { %3192 = vmatpush3.msra.mxu1 %v3978_v59 }
 0x159   :  { %3193 = vmatprep.subr.mxu1 %v3987_v63 }
 0x15a   :  { %3124 = vmatpush3.bf16.msra.mxu0 %v3423_v23  ;;  %3194 = vmatpush3.msra.mxu1 %v3987_v63 }
 0x15b   :  { %3149 = vmatprep.subr.mxu0 %v3965_v9  ;;  %3195 = vmatprep.subr.mxu1 %v3996_v16 }
 0x15c   :  { %3196 = vmatpush3.msra.mxu1 %v3996_v16 }
 0x15d   :  { %3126 = vmatmul.mubr.bf16.vlgmr.msra.gmra.mxu0 %v2712_v24  ;;  %3197 = vmatprep.subr.mxu1 %v4005_v31 }
 0x15e   :  { %3150 = vmatpush3.msra.mxu0 %v3965_v9  ;;  %3198 = vmatpush3.msra.mxu1 %v4005_v31 }
 0x15f   :  { %3151 = vmatprep.subr.mxu0 %v3970_v27  ;;  %3199 = vmatprep.subr.mxu1 %v4014_v32 }
 0x160   :  { %3152 = vmatpush3.msra.mxu0 %v3970_v27  ;;  %3200 = vmatpush3.msra.mxu1 %v4014_v32 }
 0x161   :  { %3153 = vmatprep.subr.mxu0 %v3978_v59  ;;  %3201 = vmatprep.subr.mxu1 %v4027_v17 }
 0x162   :  { %3154 = vmatpush3.msra.mxu0 %v3978_v59  ;;  %3202 = vmatpush3.msra.mxu1 %v4027_v17 }
 0x163   :  { %3155 = vmatprep.subr.mxu0 %v3987_v63  ;;  %3203 = vmatprep.subr.mxu1 %v4036_v29 }
 0x164   :  { %3156 = vmatpush3.msra.mxu0 %v3987_v63  ;;  %3204 = vmatpush3.msra.mxu1 %v4036_v29 }
 0x165   :  { %3157 = vmatprep.subr.mxu0 %v3996_v16  ;;  %3205 = vmatprep.subr.mxu1 %v4046_v18 }
 0x166   :  { %3158 = vmatpush3.msra.mxu0 %v3996_v16  ;;  %3206 = vmatpush3.msra.mxu1 %v4046_v18 }
 0x167   :  { %3159 = vmatprep.subr.mxu0 %v4005_v31  ;;  %3207 = vmatprep.subr.mxu1 %v4054_v28 }
 0x168   :  { %3160 = vmatpush3.msra.mxu0 %v4005_v31  ;;  %3208 = vmatpush3.msra.mxu1 %v4054_v28 }
 0x169   :  { %3161 = vmatprep.subr.mxu0 %v4014_v32  ;;  %3209 = vmatprep.subr.mxu1 %v4063_v33 }
 0x16a   :  { %3162 = vmatpush3.msra.mxu0 %v4014_v32  ;;  %3210 = vmatpush3.msra.mxu1 %v4063_v33 }
 0x16b   :  { %3163 = vmatprep.subr.mxu0 %v4027_v17  ;;  %3211 = vmatprep.subr.mxu1 %v4072_v34 }
 0x16c   :  { %3164 = vmatpush3.msra.mxu0 %v4027_v17  ;;  %3212 = vmatpush3.msra.mxu1 %v4072_v34 }
 0x16d   :  { %3165 = vmatprep.subr.mxu0 %v4036_v29  ;;  %3213 = vmatprep.subr.mxu1 %v4081_v35 }
 0x16e   :  { %3166 = vmatpush3.msra.mxu0 %v4036_v29  ;;  %3214 = vmatpush3.msra.mxu1 %v4081_v35 }
 0x16f   :  { %3167 = vmatprep.subr.mxu0 %v4046_v18  ;;  %3215 = vmatprep.subr.mxu1 %v4090_v40 }
 0x170   :  { %3168 = vmatpush3.msra.mxu0 %v4046_v18  ;;  %3216 = vmatpush3.msra.mxu1 %v4090_v40 }
 0x171   :  { %3169 = vmatprep.subr.mxu0 %v4054_v28  ;;  %3217 = vmatprep.subr.mxu1 %v4097_v42 }
 0x172   :  { %3170 = vmatpush3.msra.mxu0 %v4054_v28  ;;  %3218 = vmatpush3.msra.mxu1 %v4097_v42 }
 0x173   :  { %3171 = vmatprep.subr.mxu0 %v4063_v33 }
 0x174   :  { %3172 = vmatpush3.msra.mxu0 %v4063_v33 }
 0x175   :  { %3173 = vmatprep.subr.mxu0 %v4072_v34 }
 0x176   :  { %3174 = vmatpush3.msra.mxu0 %v4072_v34 }
 0x177   :  { %3175 = vmatprep.subr.mxu0 %v4081_v35 }
 0x178   :  { %3176 = vmatpush3.msra.mxu0 %v4081_v35 }
 0x179   :  { %3177 = vmatprep.subr.mxu0 %v4090_v40 }
 0x17a   :  { %3178 = vmatpush3.msra.mxu0 %v4090_v40 }
 0x17b   :  { %3179 = vmatprep.subr.mxu0 %v4097_v42 }
 0x17c   :  { %3180 = vmatpush3.msra.mxu0 %v4097_v42 }
 0x1d3   :  { %v3067_v44 = vpop.f32.mrf.mxu1 }
 0x1d5   :  { %v986_v47 = vpop.f32.mrf.mxu1 }
 0x1d7   :  { %v3068_v36 = vpop.f32.mrf.mxu1 }
 0x1d9   :  { %v989_v25 = vpop.f32.mrf.mxu1 }
 0x1dd   :  { %v3047_v48 = vpop.f32.mrf.mxu0 }
 0x1de   :  { %v995_v20 = vadd.f32 %v3067_v44, %v3047_v48 }
 0x1df   :  { %v877_v50 = vpop.f32.mrf.mxu0 }
 0x1e0   :  { %v987_v1 = vadd.f32 %v986_v47, %v877_v50 }
 0x1e1   :  { %v3048_v51 = vpop.f32.mrf.mxu0 }
 0x1e2   :  { %v998_v22 = vadd.f32 %v3068_v36, %v3048_v51 }
 0x1e3   :  { %v880_v26 = vpop.f32.mrf.mxu0 }
 0x1e4   :  { %v990_v10 = vadd.f32 %v989_v25, %v880_v26 }
 0x1f3   :  { %v3107_v52 = vpop.f32.mrf.mxu1 }
 0x1f5   :  { %v1327_v53 = vpop.f32.mrf.mxu1 }
 0x1f7   :  { %v3108_v55 = vpop.f32.mrf.mxu1 }
 0x1f9   :  { %v1330_v8 = vpop.f32.mrf.mxu1 }
 0x1fd   :  { %v3087_v54 = vpop.f32.mrf.mxu0 }
 0x1fe   :  { %v1148_v21 = vadd.f32 %v3087_v54, %v995_v20 }
 0x1ff   :  { %v1131_v56 = vpop.f32.mrf.mxu0 }
 0x200   :  { %v1146_v3 = vadd.f32 %v1131_v56, %v987_v1 }
 0x201   :  { %v3088_v57 = vpop.f32.mrf.mxu0 }
 0x202   :  { %v1149_v48 = vadd.f32 %v3088_v57, %v998_v22  ;;  %v3432_v22 = vld [vmem:[%s4342_s5 + $0x68] sm:$0xff]  }
 0x203   :  { %v1134_v60 = vpop.f32.mrf.mxu0 }
 0x204   :  { %v1147_v23 = vadd.f32 %v1134_v60, %v990_v10  ;;  %v3427_v10 = vld [vmem:[%s4342_s5 + $0x30] sm:$0xff]  }
 0x213   :  { %v3147_v41 = vpop.f32.mrf.mxu1 }
 0x215   :  { %v1578_v61 = vpop.f32.mrf.mxu1 }
 0x217   :  { %v3148_v6 = vpop.f32.mrf.mxu1 }
 0x219   :  { %v1581_v43 = vpop.f32.mrf.mxu1 }
 0x21d   :  { %v3127_v62 = vpop.f32.mrf.mxu0 }
 0x21e   :  { %v1445_v15 = vadd.f32 %v3127_v62, %v3107_v52 }
 0x21f   :  { %v1436_v0 = vpop.f32.mrf.mxu0 }
 0x220   :  { %v1437_v2 = vadd.f32 %v1436_v0, %v1327_v53  ;;  %v1595_v5 = vadd.f32 %v3147_v41, %v1445_v15 }
 0x221   :  { %v3128_v13 = vpop.f32.mrf.mxu0 }
 0x222   :  { %v1593_v4 = vadd.f32 %v1578_v61, %v1437_v2  ;;  %v1448_v30 = vadd.f32 %v3128_v13, %v3108_v55  ;;  %v1599_v44 = vadd.f32 %v1595_v5, %v1148_v21  ;;  %v3431_v21 = vld [vmem:[%s4342_s5 + $0x20] sm:$0xff]  }
 0x223   :  { %v1439_v49 = vpop.f32.mrf.mxu0 }
 0x224   :  { %v1597_v7 = vadd.f32 %v1593_v4, %v1146_v3  ;;  %v1440_v37 = vadd.f32 %v1439_v49, %v1330_v8  ;;  %v1596_v24 = vadd.f32 %v3148_v6, %v1448_v30  ;;  %v1607_v53 = vadd.f32 %v1604_v14, %v1599_v44  ;;  %v3426_v49 = vld [vmem:[%s4342_s5 + $0x38] sm:$0xff]  }
 0x225   :  { %3245 = vmatprep.subr.bf16.mxu1 %v3426_v49  ;;  %v1833_v44 = vld [vmem:[#allocation3] sm:$0x1] }
 0x226   :  { %v1594_v47 = vadd.f32 %v1581_v43, %v1440_v37  ;;  %v1605_v50 = vadd.f32 %v1604_v14, %v1597_v7  ;;  %v1600_v25 = vadd.f32 %v1596_v24, %v1149_v48  ;;  %v3428_v7 = vld [vmem:[%s4342_s5 + $0x78] sm:$0xff]   ;;  %v3429_v37 = vld [vmem:[%s4342_s5 + $0x28] sm:$0xff]   ;;  %v3434_v43 = vld [vmem:[%s4342_s5 + $0x60] sm:$0xff]  }
 0x227   :  { %3225 = vmatprep.subr.bf16.mxu0 %v3428_v7  ;;  %v3436_v24 = vld [vmem:[%s4342_s5 + $0x58] sm:$0xff]   ;;  %v3437_v48 = vld [vmem:[%s4342_s5 + $0x8] sm:$0xff]  }
 0x228   :  { %v1598_v52 = vadd.f32 %v1594_v47, %v1147_v23  ;;  %3181 = vmatprep.mubr.f32.mxu0 %v1605_v50  ;;  %v1608_v55 = vadd.f32 %v1604_v14, %v1600_v25  ;;  %v3433_v23 = vld [vmem:[%s4342_s5 + $0x18] sm:$0xff]   ;;  %v3435_v47 = vld [vmem:[%s4342_s5 + $0x10] sm:$0xff]   ;;  %v3439_v25 = vld [vmem:[%s4342_s5] sm:$0xff]  }
 0x22a   :  { %v1606_v26 = vadd.f32 %v1604_v14, %v1598_v52  ;;  %v3430_v14 = vld [vmem:[%s4342_s5 + $0x70] sm:$0xff]   ;;  %v1834_v52 = vsel %vm3537_vm5, 0, %v1833_v44 }
 0x22b   :  { %1835 = vst [vmem:[#allocation3] sm:$0x1] %v1834_v52 }
 0x22c   :  { %3182 = vmatmul.mubr.f32.vlgmr.msra.gmra.mxu0 %v1606_v26 }
 0x22d   :  { %3184 = vmatprep.mubr.f32.mxu0 %v1607_v53  ;;  %3226 = vmatpush3.bf16.msra.mxu0 %v3428_v7 }
 0x22e   :  { %3227 = vmatprep.subr.bf16.mxu0 %v3430_v14 }
 0x230   :  { %3185 = vmatmul.mubr.f32.gmra.mxu0 %v1608_v55 }
 0x231   :  { %3228 = vmatpush3.bf16.msra.mxu0 %v3430_v14 }
 0x232   :  { %3229 = vmatprep.subr.bf16.mxu0 %v3432_v22 }
 0x235   :  { %3230 = vmatpush3.bf16.msra.mxu0 %v3432_v22 }
 0x236   :  { %3231 = vmatprep.subr.bf16.mxu0 %v3434_v43 }
 0x239   :  { %3232 = vmatpush3.bf16.msra.mxu0 %v3434_v43 }
 0x23a   :  { %3233 = vmatprep.subr.bf16.mxu0 %v3436_v24 }
 0x23d   :  { %3234 = vmatpush3.bf16.msra.mxu0 %v3436_v24 }
 0x2ec   :  { %v3183_v56 = vpop.f32.mrf.mxu0 }
 0x2ee   :  { %v1675_v8 = vpop.f32.mrf.mxu0 }
 0x2ef   :  { %v1694_v51 = vadd.f32 %v3183_v56, %v1675_v8 }
 0x2f0   :  { %v3186_v36 = vpop.f32.mrf.mxu0 }
 0x2f2   :  { %v1685_v54 = vpop.f32.mrf.mxu0 }
 0x2f3   :  { %v1695_v41 = vadd.f32 %v1694_v51, %v1685_v54 }
 0x2f5   :  { %v1696_v60 = vadd.f32 %v3186_v36, %v1695_v41 }
 0x2f7   :  { %v1697_v61 = vrot.slane %v1696_v60, 4 }
 0x2f9   :  { %v1698_v62 = vadd.f32 %v1697_v61, %v1696_v60 }
 0x2fb   :  { %v1699_v15 = vrot.slane %v1698_v62, 2 }
 0x2fd   :  { %v1700_v57 = vadd.f32 %v1699_v15, %v1698_v62 }
 0x2ff   :  { %v1701_v0 = vrot.slane %v1700_v57, 1 }
 0x301   :  { %v1702_v1 = vadd.f32 %v1701_v0, %v1700_v57 }
 0x303   :  { %v1703_v2 = vmul.f32 0.001953125, %v1702_v1 }
 0x305   :  { %v4113_v46 = vsub.f32 %v1605_v50, %v1703_v2  ;;  %v4115_v6 = vsub.f32 %v1606_v26, %v1703_v2  ;;  %v4117_v13 = vsub.f32 %v1607_v53, %v1703_v2  ;;  %v4123_v30 = vsub.f32 %v1608_v55, %v1703_v2  ;;  %v3438_v50 = vld [vmem:[%s4342_s5 + $0x50] sm:$0xff]   ;;  %v3441_v26 = vld [vmem:[%s4342_s5 + $0x48] sm:$0xff]   ;;  %v3443_v53 = vld [vmem:[%s4342_s5 + $0x40] sm:$0xff]  }
 0x306   :  { %3235 = vmatprep.subr.bf16.mxu0 %v3438_v50  ;;  %v4183_v55 = vld [vmem:[%s4342_s5 + $0xb8] sm:$0xff]  }
 0x307   :  { %v1708_v3 = vmul.f32 %v4113_v46, %v4113_v46  ;;  %v1709_v4 = vmul.f32 %v4115_v6, %v4115_v6  ;;  %v1710_v20 = vmul.f32 %v4117_v13, %v4117_v13  ;;  %v1711_v5 = vmul.f32 %v4123_v30, %v4123_v30  ;;  %3236 = vmatpush3.bf16.msra.mxu0 %v3438_v50 }
 0x308   :  { %3237 = vmatprep.subr.bf16.mxu0 %v3441_v26 }
 0x309   :  { %3219 = vmatprep.mubr.f32.mxu1 %v1708_v3 }
 0x30a   :  { %3220 = vmatmul.mubr.f32.vlgmr.msra.gmra.mxu1 %v1709_v4  ;;  %v1815_v4 = vsub.s32 2, %v3621_v45 }
 0x30b   :  { %3222 = vmatprep.mubr.f32.mxu1 %v1710_v20  ;;  %3246 = vmatpush3.bf16.msra.mxu1 %v3426_v49  ;;  %v1823_v20 = vsub.s32 3, %v3621_v45 }
 0x30c   :  { %3247 = vmatprep.subr.bf16.mxu1 %v3427_v10  ;;  %3238 = vmatpush3.bf16.msra.mxu0 %v3441_v26 }
 0x30d   :  { %3239 = vmatprep.subr.bf16.mxu0 %v3443_v53 }
 0x30e   :  { %3223 = vmatmul.mubr.f32.gmra.mxu1 %v1711_v5  ;;  %v1816_v5 = vrot.slane %v4110_v12, %v1815_v4 }
 0x30f   :  { %3248 = vmatpush3.bf16.msra.mxu1 %v3427_v10  ;;  %v1824_v10 = vrot.slane %v4110_v12, %v1823_v20 }
 0x310   :  { %3249 = vmatprep.subr.bf16.mxu1 %v3429_v37  ;;  %3240 = vmatpush3.bf16.msra.mxu0 %v3443_v53 }
 0x311   :  { %3265 = vmatprep.subr.bf16.mxu0 %v4183_v55 }
 0x313   :  { %3250 = vmatpush3.bf16.msra.mxu1 %v3429_v37 }
 0x314   :  { %3251 = vmatprep.subr.bf16.mxu1 %v3431_v21 }
 0x317   :  { %3252 = vmatpush3.bf16.msra.mxu1 %v3431_v21 }
 0x318   :  { %3253 = vmatprep.subr.bf16.mxu1 %v3433_v23 }
 0x31b   :  { %3254 = vmatpush3.bf16.msra.mxu1 %v3433_v23 }
 0x31c   :  { %3255 = vmatprep.subr.bf16.mxu1 %v3435_v47 }
 0x31f   :  { %3256 = vmatpush3.bf16.msra.mxu1 %v3435_v47 }
 0x320   :  { %3257 = vmatprep.subr.bf16.mxu1 %v3437_v48 }
 0x323   :  { %3258 = vmatpush3.bf16.msra.mxu1 %v3437_v48 }
 0x324   :  { %3259 = vmatprep.subr.bf16.mxu1 %v3439_v25 }
 0x327   :  { %3260 = vmatpush3.bf16.msra.mxu1 %v3439_v25 }
 0x328   :  { %3285 = vmatprep.subr.mxu1 %v3965_v9 }
 0x3ca   :  { %v3221_v56 = vpop.f32.mrf.mxu1 }
 0x3cc   :  { %v1778_v8 = vpop.f32.mrf.mxu1 }
 0x3cd   :  { %v1797_v51 = vadd.f32 %v3221_v56, %v1778_v8 }
 0x3ce   :  { %v3224_v36 = vpop.f32.mrf.mxu1 }
 0x3d0   :  { %v1788_v54 = vpop.f32.mrf.mxu1 }
 0x3d1   :  { %v1798_v41 = vadd.f32 %v1797_v51, %v1788_v54 }
 0x3d3   :  { %v1799_v60 = vadd.f32 %v3224_v36, %v1798_v41 }
 0x3d5   :  { %v1800_v61 = vrot.slane %v1799_v60, 4 }
 0x3d7   :  { %v1801_v62 = vadd.f32 %v1800_v61, %v1799_v60 }
 0x3d9   :  { %v1802_v15 = vrot.slane %v1801_v62, 2 }
 0x3db   :  { %v1803_v57 = vadd.f32 %v1802_v15, %v1801_v62  ;;  %v1897_v62 = vld [vmem:[#allocation3] sm:$0xf] }
 0x3dd   :  { %v1804_v0 = vrot.slane %v1803_v57, 1 }
 0x3df   :  { %v1805_v1 = vadd.f32 %v1804_v0, %v1803_v57 }
 0x3e1   :  { %v1806_v2 = vmul.f32 0.001953125, %v1805_v1 }
 0x3e3   :  { %v1807_v3 = vadd.f32 1e-05, %v1806_v2  ;;  %v1901_v2 = vld [vmem:[#allocation3 + $0x8] sm:$0x1] }
 0x3e5   :  { %3452 = vrsqrt.f32 %v1807_v3 }
 0x3f2   :  { %v3453_v49 = vpop.eup %3452 }
 0x3f3   :  { %v1809_v7 = vmul.f32 %v3453_v49, %v4113_v46  ;;  %v1810_v37 = vmul.f32 %v3453_v49, %v4115_v6  ;;  %v1811_v14 = vmul.f32 %v3453_v49, %v4117_v13  ;;  %v1812_v22 = vmul.f32 %v3453_v49, %v4123_v30  ;;  %v1904_v49 = vld [vmem:[#allocation3 + $0xc] sm:$0xf] }
 0x3f5   :  { %v1817_v21 = vmul.f32 %v1816_v5, %v1809_v7  ;;  %v1818_v43 = vmul.f32 %v1816_v5, %v1810_v37  ;;  %v1819_v23 = vmul.f32 %v1816_v5, %v1811_v14  ;;  %v1820_v24 = vmul.f32 %v1816_v5, %v1812_v22 }
 0x3f7   :  { %v1825_v47 = vadd.f32 %v1824_v10, %v1817_v21  ;;  %v1826_v50 = vadd.f32 %v1824_v10, %v1818_v43  ;;  %v1827_v44 = vadd.f32 %v1824_v10, %v1819_v23  ;;  %v1828_v48 = vadd.f32 %v1824_v10, %v1820_v24  ;;  %v1908_v10 = vld [vmem:[#allocation3 + $0x14] sm:$0x1] }
 0x3f9   :  { %v1829_v52 = vmax.f32 %v1825_v47, 0.0  ;;  %v1830_v25 = vmax.f32 %v1826_v50, 0.0  ;;  %v1831_v26 = vmax.f32 %v1827_v44, 0.0  ;;  %v1832_v53 = vmax.f32 %v1828_v48, 0.0 }
 0x3fb   :  { %v2821_v56 = vpack.c.bf16 %v1829_v52, %v1829_v52  ;;  %v2822_v46 = vpack.c.bf16 %v1830_v25, %v1830_v25  ;;  %v2823_v8 = vpack.c.bf16 %v1831_v26, %v1831_v26  ;;  %v2824_v6 = vpack.c.bf16 %v1832_v53, %v1832_v53 }
 0x3fd   :  { %v1858_v36 = vshrl.u32 %v2821_v56, 16  ;;  %v1866_v13 = vshrl.u32 %v2822_v46, 16  ;;  %v1875_v51 = vshrl.u32 %v2823_v8, 16  ;;  %v1883_v30 = vshrl.u32 %v2824_v6, 16 }
 0x3fe   :  { %v1861_v41 = vshll.u32 %v2821_v56, 16  ;;  %v1869_v61 = vshll.u32 %v2822_v46, 16  ;;  %v1878_v57 = vshll.u32 %v2823_v8, 16  ;;  %v1886_v1 = vshll.u32 %v2824_v6, 16 }
 0x3ff   :  { %v1860_v54 = vrot.slane %v1858_v36, 7  ;;  %v1868_v60 = vrot.slane %v1866_v13, 7  ;;  %v1877_v15 = vrot.slane %v1875_v51, 7  ;;  %v1885_v0 = vrot.slane %v1883_v30, 7 }
 0x401   :  { %v1863_v3 = vor.u32 %v1861_v41, %v1860_v54  ;;  %v1864_v4 = vrot.slane %v1860_v54, 4  ;;  %v1871_v20 = vor.u32 %v1869_v61, %v1868_v60  ;;  %v1873_v5 = vrot.slane %v1868_v60, 4 }
 0x402   :  { %v1880_v7 = vor.u32 %v1878_v57, %v1877_v15  ;;  %v1881_v37 = vrot.slane %v1877_v15, 4  ;;  %v1888_v14 = vor.u32 %v1886_v1, %v1885_v0  ;;  %v1890_v22 = vrot.slane %v1885_v0, 4 }
 0x403   :  { %v1872_v21 = vsel %vm3748_vm10, %v1864_v4, %v1871_v20  ;;  %v1898_v43 = vsel %vm3738_vm9, %v1863_v3, %v1897_v62  ;;  %v1902_v23 = vsel %vm3537_vm5, %v1873_v5, %v1901_v2 }
 0x404   :  { %1899 = vst [vmem:[#allocation3] sm:$0xf] %v1898_v43  ;;  %1900 = vst [vmem:[#allocation3 + $0x4] sm:$0xf] %v1872_v21  ;;  %v1889_v24 = vsel %vm3748_vm10, %v1881_v37, %v1888_v14  ;;  %v1905_v47 = vsel %vm3738_vm9, %v1880_v7, %v1904_v49  ;;  %v1909_v50 = vsel %vm3537_vm5, %v1890_v22, %v1908_v10 }
 0x405   :  { %1903 = vst [vmem:[#allocation3 + $0x8] sm:$0x1] %v1902_v23  ;;  %1906 = vst [vmem:[#allocation3 + $0xc] sm:$0xf] %v1905_v47 }
 0x406   :  { %1907 = vst [vmem:[#allocation3 + $0x10] sm:$0xf] %v1889_v24  ;;  %1910 = vst [vmem:[#allocation3 + $0x14] sm:$0x1] %v1909_v50 }
 0x40b   :  { %v1911_v44 = vld [vmem:[#allocation3] sm:$0xf]  ;;  %v1912_v48 = vld [vmem:[#allocation3 + $0x4] sm:$0xf] }
 0x40c   :  { %v1931_v52 = vld [vmem:[#allocation3 + $0x8] sm:$0x1]  ;;  %v1934_v25 = vshrl.u32 %v1911_v44, 16  ;;  %v1937_v26 = vshll.u32 %v1911_v44, 16  ;;  %v1947_v53 = vshrl.u32 %v1912_v48, 16  ;;  %v2779_v56 = vcombine.low %v1911_v44, %v1912_v48 }
 0x40d   :  { %v1913_v46 = vld [vmem:[#allocation3 + $0xc] sm:$0xf]  ;;  %v4206_v39 = vld [vmem:[#allocation3 + $0x10] sm:$0xf]  ;;  %v1943_v6 = vshll.u32 %v1912_v48, 16  ;;  %v1953_v36 = vshll.u32 %v1931_v52, 16 }
 0x40e   :  { %v1958_v8 = vshrl.u32 %v1913_v46, 16  ;;  %v1961_v38 = vshll.u32 %v1913_v46, 16  ;;  %v1936_v13 = vrot.slane %v1934_v25, 4  ;;  %v1939_v11 = vrot.slane %v1937_v26, 5  ;;  %3261 = vmatprep.mubr.bf16.mxu1 %v2779_v56  ;;  %v4210_v62 = vld [vmem:[#allocation3 + $0x14] sm:$0x1] }
 0x40f   :  { %v1971_v51 = vshrl.u32 %v4206_v39, 16  ;;  %v2780_v30 = vcombine.low %v1913_v46, %v4206_v39  ;;  %v1945_v60 = vrot.slane %v1943_v6, 5  ;;  %v1949_v61 = vrot.slane %v1947_v53, 4  ;;  %v2212_v5 = vld [vmem:[#allocation3] sm:$0xe]  ;;  %v3445_v56 = vld [vmem:[%s4342_s5 + $0xb0] sm:$0xff]  }
 0x410   :  { %v1960_v54 = vrot.slane %v1958_v8, 4  ;;  %v1963_v41 = vrot.slane %v1961_v38, 5  ;;  %v1940_v15 = vor.u32 %v1939_v11, %v1936_v13  ;;  %v1967_v57 = vshll.u32 %v4206_v39, 16  ;;  %v3448_v8 = vld [vmem:[%s4342_s5 + $0x98] sm:$0xff]   ;;  %v3449_v38 = vld [vmem:[%s4342_s5 + $0x90] sm:$0xff]   ;;  %v3450_v6 = vld [vmem:[%s4342_s5 + $0x88] sm:$0xff]  }
 0x411   :  { %3262 = vmatmul.mubr.bf16.vlgmr.msra.gmra.mxu1 %v2780_v30  ;;  %v1973_v0 = vrot.slane %v1971_v51, 4  ;;  %v1950_v1 = vor.u32 %v1949_v61, %v1945_v60  ;;  %v1977_v20 = vshll.u32 %v4210_v62, 16  ;;  %v2220_v49 = vrot.slane %v1912_v48, 5  ;;  %v3451_v13 = vld [vmem:[%s4342_s5 + $0x80] sm:$0xff]  }
 0x412   :  { %v1964_v2 = vor.u32 %v1963_v41, %v1960_v54  ;;  %3286 = vmatpush3.msra.mxu1 %v3965_v9  ;;  %v1941_v3 = vrot.slane %v1940_v15, 4  ;;  %v1969_v4 = vrot.slane %v1967_v57, 5  ;;  %v1955_v7 = vrot.slane %v1953_v36, 5  ;;  %v2213_v11 = vld [vmem:[#allocation3 + $0xc] sm:$0xe] }
 0x413   :  { %3287 = vmatprep.subr.mxu1 %v3970_v27  ;;  %v1951_v10 = vrot.slane %v1950_v1, 4  ;;  %v2222_v21 = vrot.slane %v2220_v49, 4  ;;  %v2789_v23 = vrot.slane %v2212_v5, 9  ;;  %v2223_v24 = vrot.slane %v1931_v52, 5 }
 0x414   :  { %v1965_v37 = vrot.slane %v1964_v2, 4  ;;  %3288 = vmatpush3.msra.mxu1 %v3970_v27  ;;  %v1946_v14 = vsel %vm3785_vm13, %v1941_v3, %v1945_v60  ;;  %v1974_v22 = vor.u32 %v1973_v0, %v1969_v4  ;;  %v1979_v48 = vrot.slane %v1977_v20, 5 }
 0x415   :  { %3289 = vmatprep.subr.mxu1 %v3978_v59  ;;  %v1956_v43 = vsel %vm3785_vm13, %v1951_v10, %v1955_v7  ;;  %v2224_v25 = vsel %vm3813_vm0, %v2222_v21, %v2223_v24  ;;  %v2221_v53 = vsel %vm3813_vm0, %v2789_v23, %v2220_v49  ;;  %v2227_v36 = vrot.slane %v4206_v39, 5 }
 0x416   :  { %3290 = vmatpush3.msra.mxu1 %v3978_v59  ;;  %v2769_v47 = vcombine.low %v1946_v14, %v1956_v43  ;;  %v1970_v50 = vsel %vm3785_vm13, %v1965_v37, %v1969_v4  ;;  %v1975_v44 = vrot.slane %v1974_v22, 4  ;;  %v2807_v46 = vcombine.low %v2221_v53, %v2224_v25 }
 0x417   :  { %3291 = vmatprep.subr.mxu1 %v3987_v63  ;;  %v2229_v51 = vrot.slane %v2227_v36, 4  ;;  %v2790_v30 = vrot.slane %v2213_v11, 9  ;;  %v2230_v54 = vrot.slane %v4210_v62, 5 }
 0x418   :  { %3292 = vmatpush3.msra.mxu1 %v3987_v63  ;;  %3241 = vmatprep.mubr.bf16.mxu0 %v2769_v47  ;;  %v1980_v26 = vsel %vm3785_vm13, %v1975_v44, %v1979_v48 }
 0x419   :  { %3293 = vmatprep.subr.mxu1 %v3996_v16  ;;  %v2770_v52 = vcombine.low %v1970_v50, %v1980_v26  ;;  %v2231_v39 = vsel %vm3813_vm0, %v2229_v51, %v2230_v54  ;;  %v2228_v41 = vsel %vm3813_vm0, %v2790_v30, %v2227_v36 }
 0x41a   :  { %3294 = vmatpush3.msra.mxu1 %v3996_v16  ;;  %v2808_v60 = vcombine.low %v2228_v41, %v2231_v39 }
 0x41b   :  { %3295 = vmatprep.subr.mxu1 %v4005_v31  ;;  %3242 = vmatmul.mubr.bf16.vlgmr.msra.gmra.mxu0 %v2770_v52 }
 0x41c   :  { %3296 = vmatpush3.msra.mxu1 %v4005_v31  ;;  %3266 = vmatpush3.bf16.msra.mxu0 %v4183_v55  ;;  %v3447_v55 = vld [vmem:[%s4342_s5 + $0xa0] sm:$0xff]  }
 0x41d   :  { %3281 = vmatprep.mubr.bf16.mxu0 %v2807_v46  ;;  %3267 = vmatprep.subr.bf16.mxu0 %v3445_v56 }
 0x41e   :  { %3297 = vmatprep.subr.mxu1 %v4014_v32 }
 0x41f   :  { %3298 = vmatpush3.msra.mxu1 %v4014_v32 }
 0x420   :  { %3299 = vmatprep.subr.mxu1 %v4027_v17  ;;  %3268 = vmatpush3.bf16.msra.mxu0 %v3445_v56 }
 0x421   :  { %3300 = vmatpush3.msra.mxu1 %v4027_v17  ;;  %3269 = vmatprep.subr.bf16.mxu0 %v3446_v19 }
 0x422   :  { %3301 = vmatprep.subr.mxu1 %v4036_v29 }
 0x423   :  { %3302 = vmatpush3.msra.mxu1 %v4036_v29 }
 0x424   :  { %3303 = vmatprep.subr.mxu1 %v4046_v18  ;;  %3270 = vmatpush3.bf16.msra.mxu0 %v3446_v19 }
 0x425   :  { %3304 = vmatpush3.msra.mxu1 %v4046_v18  ;;  %3271 = vmatprep.subr.bf16.mxu0 %v3447_v55 }
 0x426   :  { %3305 = vmatprep.subr.mxu1 %v4054_v28 }
 0x427   :  { %3306 = vmatpush3.msra.mxu1 %v4054_v28 }
 0x428   :  { %3307 = vmatprep.subr.mxu1 %v4063_v33  ;;  %3272 = vmatpush3.bf16.msra.mxu0 %v3447_v55 }
 0x429   :  { %3308 = vmatpush3.msra.mxu1 %v4063_v33  ;;  %3273 = vmatprep.subr.bf16.mxu0 %v3448_v8 }
 0x42a   :  { %3309 = vmatprep.subr.mxu1 %v4072_v34 }
 0x42b   :  { %3310 = vmatpush3.msra.mxu1 %v4072_v34 }
 0x42c   :  { %3311 = vmatprep.subr.mxu1 %v4081_v35  ;;  %3274 = vmatpush3.bf16.msra.mxu0 %v3448_v8 }
 0x42d   :  { %3312 = vmatpush3.msra.mxu1 %v4081_v35  ;;  %3275 = vmatprep.subr.bf16.mxu0 %v3449_v38 }
 0x42e   :  { %3313 = vmatprep.subr.mxu1 %v4090_v40 }
 0x42f   :  { %3314 = vmatpush3.msra.mxu1 %v4090_v40 }
 0x430   :  { %3315 = vmatprep.subr.mxu1 %v4097_v42  ;;  %3276 = vmatpush3.bf16.msra.mxu0 %v3449_v38 }
 0x431   :  { %3316 = vmatpush3.msra.mxu1 %v4097_v42  ;;  %3277 = vmatprep.subr.bf16.mxu0 %v3450_v6 }
 0x434   :  { %3278 = vmatpush3.bf16.msra.mxu0 %v3450_v6 }
 0x435   :  { %3279 = vmatprep.subr.bf16.mxu0 %v3451_v13 }
 0x438   :  { %3280 = vmatpush3.bf16.msra.mxu0 %v3451_v13 }
 0x439   :  { %3323 = vmatprep.subr.mxu0 %v3965_v9 }
 0x43b   :  { %3282 = vmatmul.mubr.bf16.vlgmr.msra.gmra.mxu0 %v2808_v60 }
 0x43c   :  { %3324 = vmatpush3.msra.mxu0 %v3965_v9 }
 0x43d   :  { %3325 = vmatprep.subr.mxu0 %v3970_v27 }
 0x43e   :  { %3326 = vmatpush3.msra.mxu0 %v3970_v27 }
 0x43f   :  { %3327 = vmatprep.subr.mxu0 %v3978_v59 }
 0x440   :  { %3328 = vmatpush3.msra.mxu0 %v3978_v59 }
 0x441   :  { %3329 = vmatprep.subr.mxu0 %v3987_v63 }
 0x442   :  { %3330 = vmatpush3.msra.mxu0 %v3987_v63 }
 0x443   :  { %3331 = vmatprep.subr.mxu0 %v3996_v16 }
 0x444   :  { %3332 = vmatpush3.msra.mxu0 %v3996_v16 }
 0x445   :  { %3333 = vmatprep.subr.mxu0 %v4005_v31 }
 0x446   :  { %3334 = vmatpush3.msra.mxu0 %v4005_v31  ;;  %v2360_v31 = vsub.s32 4, %v3621_v45 }
 0x447   :  { %3335 = vmatprep.subr.mxu0 %v4014_v32 }
 0x448   :  { %3336 = vmatpush3.msra.mxu0 %v4014_v32 }
 0x449   :  { %3337 = vmatprep.subr.mxu0 %v4027_v17 }
 0x44a   :  { %3338 = vmatpush3.msra.mxu0 %v4027_v17 }
 0x44b   :  { %3339 = vmatprep.subr.mxu0 %v4036_v29 }
 0x44c   :  { %3340 = vmatpush3.msra.mxu0 %v4036_v29 }
 0x44d   :  { %3341 = vmatprep.subr.mxu0 %v4046_v18 }
 0x44e   :  { %3342 = vmatpush3.msra.mxu0 %v4046_v18 }
 0x44f   :  { %3343 = vmatprep.subr.mxu0 %v4054_v28 }
 0x450   :  { %3344 = vmatpush3.msra.mxu0 %v4054_v28  ;;  %v2361_v28 = vrot.slane %v4110_v12, %v2360_v31 }
 0x451   :  { %3345 = vmatprep.subr.mxu0 %v4063_v33 }
 0x452   :  { %3346 = vmatpush3.msra.mxu0 %v4063_v33 }
 0x453   :  { %3347 = vmatprep.subr.mxu0 %v4072_v34 }
 0x454   :  { %3348 = vmatpush3.msra.mxu0 %v4072_v34 }
 0x455   :  { %3349 = vmatprep.subr.mxu0 %v4081_v35 }
 0x456   :  { %3350 = vmatpush3.msra.mxu0 %v4081_v35 }
 0x457   :  { %3351 = vmatprep.subr.mxu0 %v4090_v40 }
 0x458   :  { %3352 = vmatpush3.msra.mxu0 %v4090_v40 }
 0x459   :  { %3353 = vmatprep.subr.mxu0 %v4097_v42 }
 0x45a   :  { %3354 = vmatpush3.msra.mxu0 %v4097_v42 }
 0x4d1   :  { %v3263_v27 = vpop.f32.mrf.mxu1 }
 0x4d3   :  { %v2197_v63 = vpop.f32.mrf.mxu1 }
 0x4d5   :  { %v3264_v32 = vpop.f32.mrf.mxu1 }
 0x4d7   :  { %v2200_v34 = vpop.f32.mrf.mxu1 }
 0x4db   :  { %v3243_v58 = vpop.f32.mrf.mxu0 }
 0x4dc   :  { %v2206_v35 = vadd.f32 %v3263_v27, %v3243_v58  ;;  %v2580_v27 = vsub.s32 6, %v3621_v45 }
 0x4dd   :  { %v2088_v9 = vpop.f32.mrf.mxu0 }
 0x4de   :  { %v2198_v29 = vadd.f32 %v2197_v63, %v2088_v9  ;;  %v2572_v9 = vsub.s32 5, %v3621_v45 }
 0x4df   :  { %v3244_v59 = vpop.f32.mrf.mxu0 }
 0x4e0   :  { %v2209_v57 = vadd.f32 %v3264_v32, %v3244_v59  ;;  %v2573_v59 = vrot.slane %v4110_v12, %v2572_v9 }
 0x4e1   :  { %v2091_v16 = vpop.f32.mrf.mxu0 }
 0x4e2   :  { %v2201_v61 = vadd.f32 %v2200_v34, %v2091_v16  ;;  %v2581_v16 = vrot.slane %v4110_v12, %v2580_v27 }
 0x4fb   :  { %v3283_v17 = vpop.f32.mrf.mxu0 }
 0x4fc   :  { %v2356_v62 = vadd.f32 %v3283_v17, %v2206_v35 }
 0x4fd   :  { %v2339_v18 = vpop.f32.mrf.mxu0 }
 0x4fe   :  { %v2354_v33 = vadd.f32 %v2339_v18, %v2198_v29  ;;  %v2364_v3 = vadd.f32 %v2361_v28, %v2356_v62 }
 0x4ff   :  { %v3284_v40 = vpop.f32.mrf.mxu0 }
 0x500   :  { %v2362_v42 = vadd.f32 %v2361_v28, %v2354_v33  ;;  %v2357_v1 = vadd.f32 %v3284_v40, %v2209_v57 }
 0x501   :  { %v2342_v15 = vpop.f32.mrf.mxu0 }
 0x502   :  { %v2355_v0 = vadd.f32 %v2342_v15, %v2201_v61  ;;  %3317 = vmatprep.mubr.f32.mxu1 %v2362_v42  ;;  %v2365_v4 = vadd.f32 %v2361_v28, %v2357_v1 }
 0x504   :  { %v2363_v2 = vadd.f32 %v2361_v28, %v2355_v0 }
 0x506   :  { %3318 = vmatmul.mubr.f32.vlgmr.msra.gmra.mxu1 %v2363_v2 }
 0x507   :  { %3320 = vmatprep.mubr.f32.mxu1 %v2364_v3 }
 0x50a   :  { %3321 = vmatmul.mubr.f32.gmra.mxu1 %v2365_v4 }
 0x5c6   :  { %v3319_v20 = vpop.f32.mrf.mxu1 }
 0x5c8   :  { %v2432_v5 = vpop.f32.mrf.mxu1 }
 0x5c9   :  { %v2451_v10 = vadd.f32 %v3319_v20, %v2432_v5 }
 0x5ca   :  { %v3322_v49 = vpop.f32.mrf.mxu1 }
 0x5cc   :  { %v2442_v7 = vpop.f32.mrf.mxu1 }
 0x5cd   :  { %v2452_v37 = vadd.f32 %v2451_v10, %v2442_v7 }
 0x5cf   :  { %v2453_v14 = vadd.f32 %v3322_v49, %v2452_v37 }
 0x5d1   :  { %v2454_v22 = vrot.slane %v2453_v14, 4 }
 0x5d3   :  { %v2455_v21 = vadd.f32 %v2454_v22, %v2453_v14 }
 0x5d5   :  { %v2456_v43 = vrot.slane %v2455_v21, 2 }
 0x5d7   :  { %v2457_v23 = vadd.f32 %v2456_v43, %v2455_v21 }
 0x5d9   :  { %v2458_v24 = vrot.slane %v2457_v23, 1 }
 0x5db   :  { %v2459_v47 = vadd.f32 %v2458_v24, %v2457_v23 }
 0x5dd   :  { %v2460_v50 = vmul.f32 0.001953125, %v2459_v47 }
 0x5df   :  { %v2461_v44 = vsub.f32 %v2362_v42, %v2460_v50  ;;  %v2462_v48 = vsub.f32 %v2363_v2, %v2460_v50  ;;  %v2463_v25 = vsub.f32 %v2364_v3, %v2460_v50  ;;  %v2464_v53 = vsub.f32 %v2365_v4, %v2460_v50 }
 0x5e1   :  { %v2465_v26 = vmul.f32 %v2461_v44, %v2461_v44  ;;  %v2466_v52 = vmul.f32 %v2462_v48, %v2462_v48  ;;  %v2467_v56 = vmul.f32 %v2463_v25, %v2463_v25  ;;  %v2468_v46 = vmul.f32 %v2464_v53, %v2464_v53 }
 0x5e3   :  { %3355 = vmatprep.mubr.f32.mxu0 %v2465_v26 }
 0x5e4   :  { %3356 = vmatmul.mubr.f32.vlgmr.msra.gmra.mxu0 %v2466_v52 }
 0x5e5   :  { %3358 = vmatprep.mubr.f32.mxu0 %v2467_v56 }
 0x5e8   :  { %3359 = vmatmul.mubr.f32.gmra.mxu0 %v2468_v46 }
 0x6a4   :  { %v3357_v19 = vpop.f32.mrf.mxu0 }
 0x6a6   :  { %v2535_v55 = vpop.f32.mrf.mxu0 }
 0x6a7   :  { %v2554_v38 = vadd.f32 %v3357_v19, %v2535_v55 }
 0x6a8   :  { %v3360_v8 = vpop.f32.mrf.mxu0 }
 0x6aa   :  { %v2545_v6 = vpop.f32.mrf.mxu0 }
 0x6ab   :  { %v2555_v36 = vadd.f32 %v2554_v38, %v2545_v6 }
 0x6ad   :  { %v2556_v13 = vadd.f32 %v3360_v8, %v2555_v36 }
 0x6af   :  { %v2557_v11 = vrot.slane %v2556_v13, 4 }
 0x6b1   :  { %v2558_v51 = vadd.f32 %v2557_v11, %v2556_v13 }
 0x6b3   :  { %v2559_v30 = vrot.slane %v2558_v51, 2 }
 0x6b5   :  { %v2560_v54 = vadd.f32 %v2559_v30, %v2558_v51 }
 0x6b7   :  { %v2561_v39 = vrot.slane %v2560_v54, 1 }
 0x6b9   :  { %v2562_v41 = vadd.f32 %v2561_v39, %v2560_v54 }
 0x6bb   :  { %v2563_v60 = vmul.f32 0.001953125, %v2562_v41 }
 0x6bd   :  { %v2564_v58 = vadd.f32 1e-05, %v2563_v60 }
 0x6bf   :  { %3454 = vrsqrt.f32 %v2564_v58 }
 0x6cc   :  { %v3455_v63 = vpop.eup %3454 }
 0x6cd   :  { %v2566_v31 = vmul.f32 %v3455_v63, %v2461_v44  ;;  %v2567_v32 = vmul.f32 %v3455_v63, %v2462_v48  ;;  %v2568_v17 = vmul.f32 %v3455_v63, %v2463_v25  ;;  %v2569_v29 = vmul.f32 %v3455_v63, %v2464_v53 }
 0x6cf   :  { %v2574_v18 = vmul.f32 %v2573_v59, %v2566_v31  ;;  %v2575_v28 = vmul.f32 %v2573_v59, %v2567_v32  ;;  %v2576_v33 = vmul.f32 %v2573_v59, %v2568_v17  ;;  %v2577_v34 = vmul.f32 %v2573_v59, %v2569_v29 }
 0x6d1   :  { %v2582_v35 = vadd.f32 %v2581_v16, %v2574_v18  ;;  %v2583_v40 = vadd.f32 %v2581_v16, %v2575_v28  ;;  %v2584_v61 = vadd.f32 %v2581_v16, %v2576_v33  ;;  %v2585_v42 = vadd.f32 %v2581_v16, %v2577_v34 }
 0x6d3   :  { %v2586_v62 = vmax.f32 %v2582_v35, 0.0  ;;  %v2587_v15 = vmax.f32 %v2583_v40, 0.0  ;;  %v2588_v45 = vmax.f32 %v2584_v61, 0.0  ;;  %v2589_v57 = vmax.f32 %v2585_v42, 0.0 }
 0x6d5   :  { %2590 = vst [vmem:[%s4343_s8] sm:$0xff] %v2586_v62  ;;  %2591 = vst [vmem:[%s4343_s8 + $0x8] sm:$0xff] %v2587_v15 }
 0x6d6   :  { %2592 = vst [vmem:[%s4343_s8 + $0x10] sm:$0xff] %v2588_v45  ;;  %2593 = vst [vmem:[%s4343_s8 + $0x18] sm:$0xff] %v2589_v57 }

</bundles_post_ra>
